<compile_context>
chip_gen: v5e
topology: v5e:2x2
jax: 0.10.0
libtpu: 0.0.40
codegen_flags: <defaults>
</compile_context>

<pallas_src>
import math
import functools

import numpy as np
import jax
import jax.numpy as jnp
from jax.experimental import pallas as pl
from jax.experimental.pallas import tpu as pltpu


# ---------------------------- config (mirrors cfg) ----------------------------
class Cfg:
    cont_cols = ["c0", "c1", "c2", "c3"]  # 4 continuous features
    hidden_size = 32
    seq_len = 8
    nlayers = 2
    nheads = 4
    dropout = 0.0          # inference: dropout == identity
    target_size = 2
    model_type = "seq2seq"


LN_EPS_TORCH = 1e-5    # nn.LayerNorm default (cont_emb, reg head)
LN_EPS_BERT = 1e-12    # BertLayerNorm eps
OUT_LANES = 128        # lane-dense padded width of the weight slab / kernel output
_ROW_ALIGN = 8         # every slab block starts on an 8-sublane boundary


# ------------------------------ in-kernel helpers ------------------------------
def _layernorm(x, gamma, beta, eps):
    mu = jnp.mean(x, axis=-1, keepdims=True)
    xc = x - mu
    var = jnp.mean(xc * xc, axis=-1, keepdims=True)
    return xc * jax.lax.rsqrt(var + eps) * gamma + beta


def _gelu(x):
    # exact (erf) GELU, as used by BERT
    return 0.5 * x * (1.0 + jax.lax.erf(x * (1.0 / math.sqrt(2.0))))


# ------------------------------ fused forward kernel ---------------------------
def fused_forward_kernel(cont_ref, mask_ref, slab_ref, o_ref, *,
                         layout, B, S, H, nheads, nlayers):
    hd = H // nheads
    scale = 1.0 / math.sqrt(hd)
    N = B * S

    def rd(name):
        r0, nr, nc = layout[name]
        return slab_ref[r0:r0 + nr, :nc]          # static slice of the packed slab

    # additive attention-mask bias, computed in-kernel from the raw (B, S) mask
    bias3 = ((1.0 - mask_ref[...]) * -10000.0)[:, None, :]     # (B, 1, S)
    bias_hb = jnp.concatenate([bias3] * nheads, axis=0)        # (nheads*B, 1, S)

    # ---- cont_emb: Linear(C -> H) + LayerNorm ----
    x = jnp.dot(cont_ref[...], rd("ce_w"),
                preferred_element_type=jnp.float32) + rd("ce_b")
    x = _layernorm(x, rd("ce_g"), rd("ce_beta"), LN_EPS_TORCH)          # (N, H)

    # ---- BertEncoder: nlayers statically-unrolled transformer layers ----
    for l in range(nlayers):
        wqkv = rd(f"l{l}_wqkv"); bqkv = rd(f"l{l}_bqkv")
        wo = rd(f"l{l}_wo"); bo = rd(f"l{l}_bo")
        g1 = rd(f"l{l}_g1"); b1 = rd(f"l{l}_b1")
        wi = rd(f"l{l}_wi"); bi = rd(f"l{l}_bi")
        wf = rd(f"l{l}_wf"); bf = rd(f"l{l}_bf")
        g2 = rd(f"l{l}_g2"); b2 = rd(f"l{l}_b2")

        # fused QKV projection: one (N,H)@(H,3H) MXU push
        qkv = jnp.dot(x, wqkv, preferred_element_type=jnp.float32) + bqkv   # (N, 3H)
        qkv3 = qkv.reshape(B, S, 3 * H)

        # stack heads on the leading (batch) axis -> one scores einsum, one softmax,
        # one ctx einsum for ALL heads
        def heads(base):
            return jnp.concatenate(
                [qkv3[:, :, base + h * hd: base + (h + 1) * hd] for h in range(nheads)],
                axis=0)                                                     # (nheads*B, S, hd)

        q = heads(0)
        k = heads(H)
        v = heads(2 * H)

        scores = jnp.einsum('bqd,bkd->bqk', q, k,
                            preferred_element_type=jnp.float32) * scale + bias_hb
        m = jnp.max(scores, axis=-1, keepdims=True)
        p = jnp.exp(scores - m)
        probs = p * pl.reciprocal(jnp.sum(p, axis=-1, keepdims=True), approx=True)
        ctx = jnp.einsum('bqk,bkd->bqd', probs, v,
                         preferred_element_type=jnp.float32)                # (nheads*B, S, hd)

        # merge heads back to (N, H) and apply the full output projection once
        ctx = jnp.concatenate([ctx[h * B:(h + 1) * B] for h in range(nheads)],
                              axis=-1).reshape(N, H)
        attn = jnp.dot(ctx, wo, preferred_element_type=jnp.float32) + bo

        h1 = _layernorm(attn + x, g1, b1, LN_EPS_BERT)
        inter = _gelu(jnp.dot(h1, wi, preferred_element_type=jnp.float32) + bi)
        ffn = jnp.dot(inter, wf, preferred_element_type=jnp.float32) + bf
        x = _layernorm(ffn + h1, g2, b2, LN_EPS_BERT)

    # ---- regression head: Linear -> LN -> ReLU -> Linear -> LN -> ReLU -> Linear ----
    # (applied row-wise to all N rows; the wrapper selects the middle token for the
    #  non-seq2seq mode, so the only store is one lane-dense (N, 128) slab)
    r = jnp.dot(x, rd("r_w1"), preferred_element_type=jnp.float32) + rd("r_b1")
    r = jnp.maximum(_layernorm(r, rd("r_g1"), rd("r_be1"), LN_EPS_TORCH), 0.0)
    r = jnp.dot(r, rd("r_w2"), preferred_element_type=jnp.float32) + rd("r_b2")
    r = jnp.maximum(_layernorm(r, rd("r_g2"), rd("r_be2"), LN_EPS_TORCH), 0.0)
    o_ref[...] = jnp.dot(r, rd("r_w3"), preferred_element_type=jnp.float32) + rd("r_b3")


# --------------------------------- weight packing -------------------------------
def pack_slab(params, cfg):
    """Pack every parameter into one (rows, 128) f32 slab (blocks 8-row aligned).
    Q/K/V weights are fused into one (H, 3H) block; the final Linear is lane-padded
    to 128.  Returns (slab, layout) where layout[name] = (row_offset, n_rows, n_cols)."""
    H = cfg.hidden_size
    layout = {}
    blocks = []
    row = 0

    def add(name, arr):
        nonlocal row
        arr = np.asarray(arr, dtype=np.float32)
        nr, nc = arr.shape
        layout[name] = (row, nr, nc)
        pr = ((nr + _ROW_ALIGN - 1) // _ROW_ALIGN) * _ROW_ALIGN
        blk = np.zeros((pr, OUT_LANES), np.float32)
        blk[:nr, :nc] = arr
        blocks.append(blk)
        row += pr

    ce = params["cont_emb"]
    add("ce_w", ce["w"]); add("ce_b", ce["b"]); add("ce_g", ce["g"]); add("ce_beta", ce["beta"])

    for l, lp in enumerate(params["layers"]):
        wq, bq, wk, bk, wv, bv, wo, bo, g1, b1, wi, bi, wf, bf, g2, b2 = lp
        add(f"l{l}_wqkv", np.concatenate([np.asarray(wq), np.asarray(wk), np.asarray(wv)], axis=1))
        add(f"l{l}_bqkv", np.concatenate([np.asarray(bq), np.asarray(bk), np.asarray(bv)], axis=1))
        add(f"l{l}_wo", wo); add(f"l{l}_bo", bo)
        add(f"l{l}_g1", g1); add(f"l{l}_b1", b1)
        add(f"l{l}_wi", wi); add(f"l{l}_bi", bi)
        add(f"l{l}_wf", wf); add(f"l{l}_bf", bf)
        add(f"l{l}_g2", g2); add(f"l{l}_b2", b2)

    w1, b1, g1, be1, w2, b2, g2, be2, w3, b3 = params["reg"]
    add("r_w1", w1); add("r_b1", b1); add("r_g1", g1); add("r_be1", be1)
    add("r_w2", w2); add("r_b2", b2); add("r_g2", g2); add("r_be2", be2)
    w3 = np.asarray(w3, np.float32); b3 = np.asarray(b3, np.float32)
    w3p = np.zeros((H, OUT_LANES), np.float32); w3p[:, :w3.shape[1]] = w3
    b3p = np.zeros((1, OUT_LANES), np.float32); b3p[:, :b3.shape[1]] = b3
    add("r_w3", w3p); add("r_b3", b3p)

    slab = np.concatenate(blocks, axis=0)
    return jnp.asarray(slab), layout


# --------------------------------- wrapper -------------------------------------
_VMEM = pl.BlockSpec(memory_space=pltpu.MemorySpace.VMEM)


def transformer_forward(slab, layout, cont_x, mask, cfg):
    B, S, C = cont_x.shape
    H = cfg.hidden_size
    T = cfg.target_size
    N = B * S

    kern = functools.partial(fused_forward_kernel, layout=layout, B=B, S=S, H=H,
                             nheads=cfg.nheads, nlayers=cfg.nlayers)
    out = pl.pallas_call(
        kern,
        out_shape=jax.ShapeDtypeStruct((N, OUT_LANES), jnp.float32),
        in_specs=[_VMEM, _VMEM, _VMEM],
        out_specs=_VMEM,
    )(cont_x.reshape(N, C).astype(jnp.float32),
      mask.astype(jnp.float32),
      slab)

    out = out[:, :T].reshape(B, S, T)
    if cfg.model_type == "seq2seq":
        return out
    return out[:, S // 2, :]


# ------------------------------ parameter init --------------------------------
def init_params(key, cfg):
    H = cfg.hidden_size
    C = len(cfg.cont_cols)
    T = cfg.target_size
    keys = iter(jax.random.split(key, 128))

    def lin(in_f, out_f):
        w = 0.02 * jax.random.normal(next(keys), (in_f, out_f), jnp.float32)
        b = 0.02 * jax.random.normal(next(keys), (1, out_f), jnp.float32)
        return w, b

    def ln(f):
        return jnp.ones((1, f), jnp.float32), jnp.zeros((1, f), jnp.float32)

    params = {}
    w, b = lin(C, H)
    g, be = ln(H)
    params["cont_emb"] = dict(w=w, b=b, g=g, beta=be)

    layers = []
    for _ in range(cfg.nlayers):
        wq, bq = lin(H, H); wk, bk = lin(H, H); wv, bv = lin(H, H)
        wo, bo = lin(H, H); g1, b1 = ln(H)
        wi, bi = lin(H, H)                 # intermediate_size == hidden_size in this model
        wf, bf = lin(H, H); g2, b2 = ln(H)
        layers.append([wq, bq, wk, bk, wv, bv, wo, bo, g1, b1,
                       wi, bi, wf, bf, g2, b2])
    params["layers"] = layers

    w1, b1 = lin(H, H); g1, be1 = ln(H)
    w2, b2 = lin(H, H); g2, be2 = ln(H)
    w3, b3 = lin(H, T)
    params["reg"] = [w1, b1, g1, be1, w2, b2, g2, be2, w3, b3]
    return params


# ------------------------------------ main -------------------------------------
if __name__ == "__main__":
    cfg = Cfg()
    B = 2
    key = jax.random.PRNGKey(0)
    kp, kx = jax.random.split(key, 2)

    params = init_params(kp, cfg)
    slab, layout = pack_slab(params, cfg)

    cont_x = jax.random.normal(kx, (B, cfg.seq_len, len(cfg.cont_cols)), jnp.float32)
    mask = jnp.ones((B, cfg.seq_len), jnp.float32)
    mask = mask.at[1, -2:].set(0.0)   # mask out last 2 positions of batch element 1

    out = transformer_forward(slab, layout, cont_x, mask, cfg)
    out = jax.block_until_ready(out)
    assert out.shape == (B, cfg.seq_len, cfg.target_size)
    assert bool(jnp.all(jnp.isfinite(out)))
    print("KERNEL_OK")
</pallas_src>

<mosaic_0001>
module attributes {stable_mosaic.version = 11 : i64} {
  func.func @fused_forward_kernel(%arg0: memref<16x4xf32, #tpu.memory_space<vmem>>, %arg1: memref<2x8xf32, #tpu.memory_space<vmem>>, %arg2: memref<568x128xf32, #tpu.memory_space<vmem>>, %arg3: memref<16x128xf32, #tpu.memory_space<vmem>>) attributes {dimension_semantics = [], scalar_prefetch = 0 : i64, scratch_operands = 0 : i64, tpu.core_type = #tpu.core_type<tc>} {
    %c0 = arith.constant 0 : index
    %c0_0 = arith.constant 0 : index
    %0 = vector.load %arg1[%c0, %c0_0] : memref<2x8xf32, #tpu.memory_space<vmem>>, vector<2x8xf32>
    %cst = arith.constant 1.000000e+00 : f32
    %1 = vector.broadcast %cst : f32 to vector<2x8xf32>
    %2 = arith.subf %1, %0 : vector<2x8xf32>
    %cst_1 = arith.constant -1.000000e+04 : f32
    %3 = vector.broadcast %cst_1 : f32 to vector<2x8xf32>
    %4 = arith.mulf %2, %3 : vector<2x8xf32>
    %5 = vector.shape_cast %4 : vector<2x8xf32> to vector<2x1x8xf32>
    %6 = tpu.concatenate %5, %5, %5, %5 in 0 : vector<2x1x8xf32>, vector<2x1x8xf32>, vector<2x1x8xf32>, vector<2x1x8xf32> -> vector<8x1x8xf32>
    %c0_2 = arith.constant 0 : index
    %c0_3 = arith.constant 0 : index
    %7 = vector.load %arg0[%c0_2, %c0_3] : memref<16x4xf32, #tpu.memory_space<vmem>>, vector<16x4xf32>
    %c0_4 = arith.constant 0 : index
    %c0_5 = arith.constant 0 : index
    %8 = vector.load %arg2[%c0_4, %c0_5] : memref<568x128xf32, #tpu.memory_space<vmem>>, vector<4x32xf32>
    %cst_6 = arith.constant dense<0.000000e+00> : vector<16x32xf32>
    %9 = tpu.matmul %7, %8, %cst_6 {dimension_numbers = #tpu.dot_dimension_numbers<[1], [0], [0], [1], [0, 0, 1, 1], [], []>} : vector<16x4xf32>, vector<4x32xf32>, vector<16x32xf32> -> vector<16x32xf32>
    %c8 = arith.constant 8 : index
    %c0_7 = arith.constant 0 : index
    %10 = vector.load %arg2[%c8, %c0_7] : memref<568x128xf32, #tpu.memory_space<vmem>>, vector<1x32xf32>
    %11 = vector.broadcast %10 : vector<1x32xf32> to vector<16x32xf32>
    %12 = arith.addf %9, %11 : vector<16x32xf32>
    %c16 = arith.constant 16 : index
    %c0_8 = arith.constant 0 : index
    %13 = vector.load %arg2[%c16, %c0_8] : memref<568x128xf32, #tpu.memory_space<vmem>>, vector<1x32xf32>
    %c24 = arith.constant 24 : index
    %c0_9 = arith.constant 0 : index
    %14 = vector.load %arg2[%c24, %c0_9] : memref<568x128xf32, #tpu.memory_space<vmem>>, vector<1x32xf32>
    %cst_10 = arith.constant dense<0.000000e+00> : vector<16xf32>
    %15 = vector.multi_reduction <add>, %12, %cst_10 [1] : vector<16x32xf32> to vector<16xf32>
    %16 = vector.shape_cast %15 : vector<16xf32> to vector<16x1xf32>
    %cst_11 = arith.constant 3.200000e+01 : f32
    %17 = vector.broadcast %cst_11 : f32 to vector<16x1xf32>
    %18 = arith.divf %16, %17 : vector<16x1xf32>
    %19 = vector.broadcast %18 : vector<16x1xf32> to vector<16x32xf32>
    %20 = arith.subf %12, %19 : vector<16x32xf32>
    %21 = arith.mulf %20, %20 : vector<16x32xf32>
    %cst_12 = arith.constant dense<0.000000e+00> : vector<16xf32>
    %22 = vector.multi_reduction <add>, %21, %cst_12 [1] : vector<16x32xf32> to vector<16xf32>
    %23 = vector.shape_cast %22 : vector<16xf32> to vector<16x1xf32>
    %cst_13 = arith.constant 3.200000e+01 : f32
    %24 = vector.broadcast %cst_13 : f32 to vector<16x1xf32>
    %25 = arith.divf %23, %24 : vector<16x1xf32>
    %cst_14 = arith.constant 9.99999974E-6 : f32
    %26 = vector.broadcast %cst_14 : f32 to vector<16x1xf32>
    %27 = arith.addf %25, %26 : vector<16x1xf32>
    %28 = math.rsqrt %27 : vector<16x1xf32>
    %29 = vector.broadcast %28 : vector<16x1xf32> to vector<16x32xf32>
    %30 = arith.mulf %20, %29 : vector<16x32xf32>
    %31 = vector.broadcast %13 : vector<1x32xf32> to vector<16x32xf32>
    %32 = arith.mulf %30, %31 : vector<16x32xf32>
    %33 = vector.broadcast %14 : vector<1x32xf32> to vector<16x32xf32>
    %34 = arith.addf %32, %33 : vector<16x32xf32>
    %c32 = arith.constant 32 : index
    %c0_15 = arith.constant 0 : index
    %35 = vector.load %arg2[%c32, %c0_15] : memref<568x128xf32, #tpu.memory_space<vmem>>, vector<32x96xf32>
    %c64 = arith.constant 64 : index
    %c0_16 = arith.constant 0 : index
    %36 = vector.load %arg2[%c64, %c0_16] : memref<568x128xf32, #tpu.memory_space<vmem>>, vector<1x96xf32>
    %c72 = arith.constant 72 : index
    %c0_17 = arith.constant 0 : index
    %37 = vector.load %arg2[%c72, %c0_17] : memref<568x128xf32, #tpu.memory_space<vmem>>, vector<32x32xf32>
    %c104 = arith.constant 104 : index
    %c0_18 = arith.constant 0 : index
    %38 = vector.load %arg2[%c104, %c0_18] : memref<568x128xf32, #tpu.memory_space<vmem>>, vector<1x32xf32>
    %c112 = arith.constant 112 : index
    %c0_19 = arith.constant 0 : index
    %39 = vector.load %arg2[%c112, %c0_19] : memref<568x128xf32, #tpu.memory_space<vmem>>, vector<1x32xf32>
    %c120 = arith.constant 120 : index
    %c0_20 = arith.constant 0 : index
    %40 = vector.load %arg2[%c120, %c0_20] : memref<568x128xf32, #tpu.memory_space<vmem>>, vector<1x32xf32>
    %c128 = arith.constant 128 : index
    %c0_21 = arith.constant 0 : index
    %41 = vector.load %arg2[%c128, %c0_21] : memref<568x128xf32, #tpu.memory_space<vmem>>, vector<32x32xf32>
    %c160 = arith.constant 160 : index
    %c0_22 = arith.constant 0 : index
    %42 = vector.load %arg2[%c160, %c0_22] : memref<568x128xf32, #tpu.memory_space<vmem>>, vector<1x32xf32>
    %c168 = arith.constant 168 : index
    %c0_23 = arith.constant 0 : index
    %43 = vector.load %arg2[%c168, %c0_23] : memref<568x128xf32, #tpu.memory_space<vmem>>, vector<32x32xf32>
    %c200 = arith.constant 200 : index
    %c0_24 = arith.constant 0 : index
    %44 = vector.load %arg2[%c200, %c0_24] : memref<568x128xf32, #tpu.memory_space<vmem>>, vector<1x32xf32>
    %c208 = arith.constant 208 : index
    %c0_25 = arith.constant 0 : index
    %45 = vector.load %arg2[%c208, %c0_25] : memref<568x128xf32, #tpu.memory_space<vmem>>, vector<1x32xf32>
    %c216 = arith.constant 216 : index
    %c0_26 = arith.constant 0 : index
    %46 = vector.load %arg2[%c216, %c0_26] : memref<568x128xf32, #tpu.memory_space<vmem>>, vector<1x32xf32>
    %cst_27 = arith.constant dense<0.000000e+00> : vector<16x96xf32>
    %47 = tpu.matmul %34, %35, %cst_27 {dimension_numbers = #tpu.dot_dimension_numbers<[1], [0], [0], [1], [0, 0, 1, 1], [], []>} : vector<16x32xf32>, vector<32x96xf32>, vector<16x96xf32> -> vector<16x96xf32>
    %48 = vector.broadcast %36 : vector<1x96xf32> to vector<16x96xf32>
    %49 = arith.addf %47, %48 : vector<16x96xf32>
    %50 = vector.shape_cast %49 : vector<16x96xf32> to vector<2x8x96xf32>
    %51 = vector.extract_strided_slice %50 {offsets = [0, 0, 0], sizes = [2, 8, 8], strides = [1, 1, 1]} : vector<2x8x96xf32> to vector<2x8x8xf32>
    %52 = vector.extract_strided_slice %50 {offsets = [0, 0, 8], sizes = [2, 8, 8], strides = [1, 1, 1]} : vector<2x8x96xf32> to vector<2x8x8xf32>
    %53 = vector.extract_strided_slice %50 {offsets = [0, 0, 16], sizes = [2, 8, 8], strides = [1, 1, 1]} : vector<2x8x96xf32> to vector<2x8x8xf32>
    %54 = vector.extract_strided_slice %50 {offsets = [0, 0, 24], sizes = [2, 8, 8], strides = [1, 1, 1]} : vector<2x8x96xf32> to vector<2x8x8xf32>
    %55 = tpu.concatenate %51, %52, %53, %54 in 0 : vector<2x8x8xf32>, vector<2x8x8xf32>, vector<2x8x8xf32>, vector<2x8x8xf32> -> vector<8x8x8xf32>
    %56 = vector.extract_strided_slice %50 {offsets = [0, 0, 32], sizes = [2, 8, 8], strides = [1, 1, 1]} : vector<2x8x96xf32> to vector<2x8x8xf32>
    %57 = vector.extract_strided_slice %50 {offsets = [0, 0, 40], sizes = [2, 8, 8], strides = [1, 1, 1]} : vector<2x8x96xf32> to vector<2x8x8xf32>
    %58 = vector.extract_strided_slice %50 {offsets = [0, 0, 48], sizes = [2, 8, 8], strides = [1, 1, 1]} : vector<2x8x96xf32> to vector<2x8x8xf32>
    %59 = vector.extract_strided_slice %50 {offsets = [0, 0, 56], sizes = [2, 8, 8], strides = [1, 1, 1]} : vector<2x8x96xf32> to vector<2x8x8xf32>
    %60 = tpu.concatenate %56, %57, %58, %59 in 0 : vector<2x8x8xf32>, vector<2x8x8xf32>, vector<2x8x8xf32>, vector<2x8x8xf32> -> vector<8x8x8xf32>
    %61 = vector.extract_strided_slice %50 {offsets = [0, 0, 64], sizes = [2, 8, 8], strides = [1, 1, 1]} : vector<2x8x96xf32> to vector<2x8x8xf32>
    %62 = vector.extract_strided_slice %50 {offsets = [0, 0, 72], sizes = [2, 8, 8], strides = [1, 1, 1]} : vector<2x8x96xf32> to vector<2x8x8xf32>
    %63 = vector.extract_strided_slice %50 {offsets = [0, 0, 80], sizes = [2, 8, 8], strides = [1, 1, 1]} : vector<2x8x96xf32> to vector<2x8x8xf32>
    %64 = vector.extract_strided_slice %50 {offsets = [0, 0, 88], sizes = [2, 8, 8], strides = [1, 1, 1]} : vector<2x8x96xf32> to vector<2x8x8xf32>
    %65 = tpu.concatenate %61, %62, %63, %64 in 0 : vector<2x8x8xf32>, vector<2x8x8xf32>, vector<2x8x8xf32>, vector<2x8x8xf32> -> vector<8x8x8xf32>
    "tpu.trace_start"() <{level = 10 : i32, message = "bqd,bkd->bqk"}> : () -> ()
    %cst_28 = arith.constant dense<0.000000e+00> : vector<8x8x8xf32>
    %66 = tpu.matmul %55, %60, %cst_28 {dimension_numbers = #tpu.dot_dimension_numbers<[2], [2], [1], [1], [0, 0, 0, 1, 1, 1], [0], [0]>} : vector<8x8x8xf32>, vector<8x8x8xf32>, vector<8x8x8xf32> -> vector<8x8x8xf32>
    "tpu.trace_stop"() : () -> ()
    %cst_29 = arith.constant 0.353553385 : f32
    %67 = vector.broadcast %cst_29 : f32 to vector<8x8x8xf32>
    %68 = arith.mulf %66, %67 : vector<8x8x8xf32>
    %69 = vector.broadcast %6 : vector<8x1x8xf32> to vector<8x8x8xf32>
    %70 = arith.addf %68, %69 : vector<8x8x8xf32>
    %cst_30 = arith.constant dense<0xFF800000> : vector<8x8xf32>
    %71 = vector.multi_reduction <maximumf>, %70, %cst_30 [2] : vector<8x8x8xf32> to vector<8x8xf32>
    %72 = vector.shape_cast %71 : vector<8x8xf32> to vector<8x8x1xf32>
    %73 = vector.broadcast %72 : vector<8x8x1xf32> to vector<8x8x8xf32>
    %74 = arith.subf %70, %73 : vector<8x8x8xf32>
    %75 = math.exp %74 : vector<8x8x8xf32>
    %cst_31 = arith.constant dense<0.000000e+00> : vector<8x8xf32>
    %76 = vector.multi_reduction <add>, %75, %cst_31 [2] : vector<8x8x8xf32> to vector<8x8xf32>
    %77 = vector.shape_cast %76 : vector<8x8xf32> to vector<8x8x1xf32>
    %78 = tpu.reciprocal %77 {approx = true} : vector<8x8x1xf32> -> vector<8x8x1xf32>
    %79 = vector.broadcast %78 : vector<8x8x1xf32> to vector<8x8x8xf32>
    %80 = arith.mulf %75, %79 : vector<8x8x8xf32>
    "tpu.trace_start"() <{level = 10 : i32, message = "bqk,bkd->bqd"}> : () -> ()
    %cst_32 = arith.constant dense<0.000000e+00> : vector<8x8x8xf32>
    %81 = tpu.matmul %80, %65, %cst_32 {dimension_numbers = #tpu.dot_dimension_numbers<[2], [1], [1], [2], [0, 0, 0, 1, 1, 2], [0], [0]>} : vector<8x8x8xf32>, vector<8x8x8xf32>, vector<8x8x8xf32> -> vector<8x8x8xf32>
    "tpu.trace_stop"() : () -> ()
    %82 = vector.extract_strided_slice %81 {offsets = [0, 0, 0], sizes = [2, 8, 8], strides = [1, 1, 1]} : vector<8x8x8xf32> to vector<2x8x8xf32>
    %83 = vector.extract_strided_slice %81 {offsets = [2, 0, 0], sizes = [2, 8, 8], strides = [1, 1, 1]} : vector<8x8x8xf32> to vector<2x8x8xf32>
    %84 = vector.extract_strided_slice %81 {offsets = [4, 0, 0], sizes = [2, 8, 8], strides = [1, 1, 1]} : vector<8x8x8xf32> to vector<2x8x8xf32>
    %85 = vector.extract_strided_slice %81 {offsets = [6, 0, 0], sizes = [2, 8, 8], strides = [1, 1, 1]} : vector<8x8x8xf32> to vector<2x8x8xf32>
    %86 = tpu.concatenate %82, %83, %84, %85 in 2 : vector<2x8x8xf32>, vector<2x8x8xf32>, vector<2x8x8xf32>, vector<2x8x8xf32> -> vector<2x8x32xf32>
    %87 = vector.shape_cast %86 : vector<2x8x32xf32> to vector<16x32xf32>
    %cst_33 = arith.constant dense<0.000000e+00> : vector<16x32xf32>
    %88 = tpu.matmul %87, %37, %cst_33 {dimension_numbers = #tpu.dot_dimension_numbers<[1], [0], [0], [1], [0, 0, 1, 1], [], []>} : vector<16x32xf32>, vector<32x32xf32>, vector<16x32xf32> -> vector<16x32xf32>
    %89 = vector.broadcast %38 : vector<1x32xf32> to vector<16x32xf32>
    %90 = arith.addf %88, %89 : vector<16x32xf32>
    %91 = arith.addf %90, %34 : vector<16x32xf32>
    %cst_34 = arith.constant dense<0.000000e+00> : vector<16xf32>
    %92 = vector.multi_reduction <add>, %91, %cst_34 [1] : vector<16x32xf32> to vector<16xf32>
    %93 = vector.shape_cast %92 : vector<16xf32> to vector<16x1xf32>
    %cst_35 = arith.constant 3.200000e+01 : f32
    %94 = vector.broadcast %cst_35 : f32 to vector<16x1xf32>
    %95 = arith.divf %93, %94 : vector<16x1xf32>
    %96 = vector.broadcast %95 : vector<16x1xf32> to vector<16x32xf32>
    %97 = arith.subf %91, %96 : vector<16x32xf32>
    %98 = arith.mulf %97, %97 : vector<16x32xf32>
    %cst_36 = arith.constant dense<0.000000e+00> : vector<16xf32>
    %99 = vector.multi_reduction <add>, %98, %cst_36 [1] : vector<16x32xf32> to vector<16xf32>
    %100 = vector.shape_cast %99 : vector<16xf32> to vector<16x1xf32>
    %cst_37 = arith.constant 3.200000e+01 : f32
    %101 = vector.broadcast %cst_37 : f32 to vector<16x1xf32>
    %102 = arith.divf %100, %101 : vector<16x1xf32>
    %cst_38 = arith.constant 9.99999996E-13 : f32
    %103 = vector.broadcast %cst_38 : f32 to vector<16x1xf32>
    %104 = arith.addf %102, %103 : vector<16x1xf32>
    %105 = math.rsqrt %104 : vector<16x1xf32>
    %106 = vector.broadcast %105 : vector<16x1xf32> to vector<16x32xf32>
    %107 = arith.mulf %97, %106 : vector<16x32xf32>
    %108 = vector.broadcast %39 : vector<1x32xf32> to vector<16x32xf32>
    %109 = arith.mulf %107, %108 : vector<16x32xf32>
    %110 = vector.broadcast %40 : vector<1x32xf32> to vector<16x32xf32>
    %111 = arith.addf %109, %110 : vector<16x32xf32>
    %cst_39 = arith.constant dense<0.000000e+00> : vector<16x32xf32>
    %112 = tpu.matmul %111, %41, %cst_39 {dimension_numbers = #tpu.dot_dimension_numbers<[1], [0], [0], [1], [0, 0, 1, 1], [], []>} : vector<16x32xf32>, vector<32x32xf32>, vector<16x32xf32> -> vector<16x32xf32>
    %113 = vector.broadcast %42 : vector<1x32xf32> to vector<16x32xf32>
    %114 = arith.addf %112, %113 : vector<16x32xf32>
    %cst_40 = arith.constant 5.000000e-01 : f32
    %115 = vector.broadcast %cst_40 : f32 to vector<16x32xf32>
    %116 = arith.mulf %115, %114 : vector<16x32xf32>
    %cst_41 = arith.constant 0.707106769 : f32
    %117 = vector.broadcast %cst_41 : f32 to vector<16x32xf32>
    %118 = arith.mulf %114, %117 : vector<16x32xf32>
    %119 = math.erf %118 : vector<16x32xf32>
    %cst_42 = arith.constant 1.000000e+00 : f32
    %120 = vector.broadcast %cst_42 : f32 to vector<16x32xf32>
    %121 = arith.addf %120, %119 : vector<16x32xf32>
    %122 = arith.mulf %116, %121 : vector<16x32xf32>
    %cst_43 = arith.constant dense<0.000000e+00> : vector<16x32xf32>
    %123 = tpu.matmul %122, %43, %cst_43 {dimension_numbers = #tpu.dot_dimension_numbers<[1], [0], [0], [1], [0, 0, 1, 1], [], []>} : vector<16x32xf32>, vector<32x32xf32>, vector<16x32xf32> -> vector<16x32xf32>
    %124 = vector.broadcast %44 : vector<1x32xf32> to vector<16x32xf32>
    %125 = arith.addf %123, %124 : vector<16x32xf32>
    %126 = arith.addf %125, %111 : vector<16x32xf32>
    %cst_44 = arith.constant dense<0.000000e+00> : vector<16xf32>
    %127 = vector.multi_reduction <add>, %126, %cst_44 [1] : vector<16x32xf32> to vector<16xf32>
    %128 = vector.shape_cast %127 : vector<16xf32> to vector<16x1xf32>
    %cst_45 = arith.constant 3.200000e+01 : f32
    %129 = vector.broadcast %cst_45 : f32 to vector<16x1xf32>
    %130 = arith.divf %128, %129 : vector<16x1xf32>
    %131 = vector.broadcast %130 : vector<16x1xf32> to vector<16x32xf32>
    %132 = arith.subf %126, %131 : vector<16x32xf32>
    %133 = arith.mulf %132, %132 : vector<16x32xf32>
    %cst_46 = arith.constant dense<0.000000e+00> : vector<16xf32>
    %134 = vector.multi_reduction <add>, %133, %cst_46 [1] : vector<16x32xf32> to vector<16xf32>
    %135 = vector.shape_cast %134 : vector<16xf32> to vector<16x1xf32>
    %cst_47 = arith.constant 3.200000e+01 : f32
    %136 = vector.broadcast %cst_47 : f32 to vector<16x1xf32>
    %137 = arith.divf %135, %136 : vector<16x1xf32>
    %cst_48 = arith.constant 9.99999996E-13 : f32
    %138 = vector.broadcast %cst_48 : f32 to vector<16x1xf32>
    %139 = arith.addf %137, %138 : vector<16x1xf32>
    %140 = math.rsqrt %139 : vector<16x1xf32>
    %141 = vector.broadcast %140 : vector<16x1xf32> to vector<16x32xf32>
    %142 = arith.mulf %132, %141 : vector<16x32xf32>
    %143 = vector.broadcast %45 : vector<1x32xf32> to vector<16x32xf32>
    %144 = arith.mulf %142, %143 : vector<16x32xf32>
    %145 = vector.broadcast %46 : vector<1x32xf32> to vector<16x32xf32>
    %146 = arith.addf %144, %145 : vector<16x32xf32>
    %c224 = arith.constant 224 : index
    %c0_49 = arith.constant 0 : index
    %147 = vector.load %arg2[%c224, %c0_49] : memref<568x128xf32, #tpu.memory_space<vmem>>, vector<32x96xf32>
    %c256 = arith.constant 256 : index
    %c0_50 = arith.constant 0 : index
    %148 = vector.load %arg2[%c256, %c0_50] : memref<568x128xf32, #tpu.memory_space<vmem>>, vector<1x96xf32>
    %c264 = arith.constant 264 : index
    %c0_51 = arith.constant 0 : index
    %149 = vector.load %arg2[%c264, %c0_51] : memref<568x128xf32, #tpu.memory_space<vmem>>, vector<32x32xf32>
    %c296 = arith.constant 296 : index
    %c0_52 = arith.constant 0 : index
    %150 = vector.load %arg2[%c296, %c0_52] : memref<568x128xf32, #tpu.memory_space<vmem>>, vector<1x32xf32>
    %c304 = arith.constant 304 : index
    %c0_53 = arith.constant 0 : index
    %151 = vector.load %arg2[%c304, %c0_53] : memref<568x128xf32, #tpu.memory_space<vmem>>, vector<1x32xf32>
    %c312 = arith.constant 312 : index
    %c0_54 = arith.constant 0 : index
    %152 = vector.load %arg2[%c312, %c0_54] : memref<568x128xf32, #tpu.memory_space<vmem>>, vector<1x32xf32>
    %c320 = arith.constant 320 : index
    %c0_55 = arith.constant 0 : index
    %153 = vector.load %arg2[%c320, %c0_55] : memref<568x128xf32, #tpu.memory_space<vmem>>, vector<32x32xf32>
    %c352 = arith.constant 352 : index
    %c0_56 = arith.constant 0 : index
    %154 = vector.load %arg2[%c352, %c0_56] : memref<568x128xf32, #tpu.memory_space<vmem>>, vector<1x32xf32>
    %c360 = arith.constant 360 : index
    %c0_57 = arith.constant 0 : index
    %155 = vector.load %arg2[%c360, %c0_57] : memref<568x128xf32, #tpu.memory_space<vmem>>, vector<32x32xf32>
    %c392 = arith.constant 392 : index
    %c0_58 = arith.constant 0 : index
    %156 = vector.load %arg2[%c392, %c0_58] : memref<568x128xf32, #tpu.memory_space<vmem>>, vector<1x32xf32>
    %c400 = arith.constant 400 : index
    %c0_59 = arith.constant 0 : index
    %157 = vector.load %arg2[%c400, %c0_59] : memref<568x128xf32, #tpu.memory_space<vmem>>, vector<1x32xf32>
    %c408 = arith.constant 408 : index
    %c0_60 = arith.constant 0 : index
    %158 = vector.load %arg2[%c408, %c0_60] : memref<568x128xf32, #tpu.memory_space<vmem>>, vector<1x32xf32>
    %cst_61 = arith.constant dense<0.000000e+00> : vector<16x96xf32>
    %159 = tpu.matmul %146, %147, %cst_61 {dimension_numbers = #tpu.dot_dimension_numbers<[1], [0], [0], [1], [0, 0, 1, 1], [], []>} : vector<16x32xf32>, vector<32x96xf32>, vector<16x96xf32> -> vector<16x96xf32>
    %160 = vector.broadcast %148 : vector<1x96xf32> to vector<16x96xf32>
    %161 = arith.addf %159, %160 : vector<16x96xf32>
    %162 = vector.shape_cast %161 : vector<16x96xf32> to vector<2x8x96xf32>
    %163 = vector.extract_strided_slice %162 {offsets = [0, 0, 0], sizes = [2, 8, 8], strides = [1, 1, 1]} : vector<2x8x96xf32> to vector<2x8x8xf32>
    %164 = vector.extract_strided_slice %162 {offsets = [0, 0, 8], sizes = [2, 8, 8], strides = [1, 1, 1]} : vector<2x8x96xf32> to vector<2x8x8xf32>
    %165 = vector.extract_strided_slice %162 {offsets = [0, 0, 16], sizes = [2, 8, 8], strides = [1, 1, 1]} : vector<2x8x96xf32> to vector<2x8x8xf32>
    %166 = vector.extract_strided_slice %162 {offsets = [0, 0, 24], sizes = [2, 8, 8], strides = [1, 1, 1]} : vector<2x8x96xf32> to vector<2x8x8xf32>
    %167 = tpu.concatenate %163, %164, %165, %166 in 0 : vector<2x8x8xf32>, vector<2x8x8xf32>, vector<2x8x8xf32>, vector<2x8x8xf32> -> vector<8x8x8xf32>
    %168 = vector.extract_strided_slice %162 {offsets = [0, 0, 32], sizes = [2, 8, 8], strides = [1, 1, 1]} : vector<2x8x96xf32> to vector<2x8x8xf32>
    %169 = vector.extract_strided_slice %162 {offsets = [0, 0, 40], sizes = [2, 8, 8], strides = [1, 1, 1]} : vector<2x8x96xf32> to vector<2x8x8xf32>
    %170 = vector.extract_strided_slice %162 {offsets = [0, 0, 48], sizes = [2, 8, 8], strides = [1, 1, 1]} : vector<2x8x96xf32> to vector<2x8x8xf32>
    %171 = vector.extract_strided_slice %162 {offsets = [0, 0, 56], sizes = [2, 8, 8], strides = [1, 1, 1]} : vector<2x8x96xf32> to vector<2x8x8xf32>
    %172 = tpu.concatenate %168, %169, %170, %171 in 0 : vector<2x8x8xf32>, vector<2x8x8xf32>, vector<2x8x8xf32>, vector<2x8x8xf32> -> vector<8x8x8xf32>
    %173 = vector.extract_strided_slice %162 {offsets = [0, 0, 64], sizes = [2, 8, 8], strides = [1, 1, 1]} : vector<2x8x96xf32> to vector<2x8x8xf32>
    %174 = vector.extract_strided_slice %162 {offsets = [0, 0, 72], sizes = [2, 8, 8], strides = [1, 1, 1]} : vector<2x8x96xf32> to vector<2x8x8xf32>
    %175 = vector.extract_strided_slice %162 {offsets = [0, 0, 80], sizes = [2, 8, 8], strides = [1, 1, 1]} : vector<2x8x96xf32> to vector<2x8x8xf32>
    %176 = vector.extract_strided_slice %162 {offsets = [0, 0, 88], sizes = [2, 8, 8], strides = [1, 1, 1]} : vector<2x8x96xf32> to vector<2x8x8xf32>
    %177 = tpu.concatenate %173, %174, %175, %176 in 0 : vector<2x8x8xf32>, vector<2x8x8xf32>, vector<2x8x8xf32>, vector<2x8x8xf32> -> vector<8x8x8xf32>
    "tpu.trace_start"() <{level = 10 : i32, message = "bqd,bkd->bqk"}> : () -> ()
    %cst_62 = arith.constant dense<0.000000e+00> : vector<8x8x8xf32>
    %178 = tpu.matmul %167, %172, %cst_62 {dimension_numbers = #tpu.dot_dimension_numbers<[2], [2], [1], [1], [0, 0, 0, 1, 1, 1], [0], [0]>} : vector<8x8x8xf32>, vector<8x8x8xf32>, vector<8x8x8xf32> -> vector<8x8x8xf32>
    "tpu.trace_stop"() : () -> ()
    %cst_63 = arith.constant 0.353553385 : f32
    %179 = vector.broadcast %cst_63 : f32 to vector<8x8x8xf32>
    %180 = arith.mulf %178, %179 : vector<8x8x8xf32>
    %181 = vector.broadcast %6 : vector<8x1x8xf32> to vector<8x8x8xf32>
    %182 = arith.addf %180, %181 : vector<8x8x8xf32>
    %cst_64 = arith.constant dense<0xFF800000> : vector<8x8xf32>
    %183 = vector.multi_reduction <maximumf>, %182, %cst_64 [2] : vector<8x8x8xf32> to vector<8x8xf32>
    %184 = vector.shape_cast %183 : vector<8x8xf32> to vector<8x8x1xf32>
    %185 = vector.broadcast %184 : vector<8x8x1xf32> to vector<8x8x8xf32>
    %186 = arith.subf %182, %185 : vector<8x8x8xf32>
    %187 = math.exp %186 : vector<8x8x8xf32>
    %cst_65 = arith.constant dense<0.000000e+00> : vector<8x8xf32>
    %188 = vector.multi_reduction <add>, %187, %cst_65 [2] : vector<8x8x8xf32> to vector<8x8xf32>
    %189 = vector.shape_cast %188 : vector<8x8xf32> to vector<8x8x1xf32>
    %190 = tpu.reciprocal %189 {approx = true} : vector<8x8x1xf32> -> vector<8x8x1xf32>
    %191 = vector.broadcast %190 : vector<8x8x1xf32> to vector<8x8x8xf32>
    %192 = arith.mulf %187, %191 : vector<8x8x8xf32>
    "tpu.trace_start"() <{level = 10 : i32, message = "bqk,bkd->bqd"}> : () -> ()
    %cst_66 = arith.constant dense<0.000000e+00> : vector<8x8x8xf32>
    %193 = tpu.matmul %192, %177, %cst_66 {dimension_numbers = #tpu.dot_dimension_numbers<[2], [1], [1], [2], [0, 0, 0, 1, 1, 2], [0], [0]>} : vector<8x8x8xf32>, vector<8x8x8xf32>, vector<8x8x8xf32> -> vector<8x8x8xf32>
    "tpu.trace_stop"() : () -> ()
    %194 = vector.extract_strided_slice %193 {offsets = [0, 0, 0], sizes = [2, 8, 8], strides = [1, 1, 1]} : vector<8x8x8xf32> to vector<2x8x8xf32>
    %195 = vector.extract_strided_slice %193 {offsets = [2, 0, 0], sizes = [2, 8, 8], strides = [1, 1, 1]} : vector<8x8x8xf32> to vector<2x8x8xf32>
    %196 = vector.extract_strided_slice %193 {offsets = [4, 0, 0], sizes = [2, 8, 8], strides = [1, 1, 1]} : vector<8x8x8xf32> to vector<2x8x8xf32>
    %197 = vector.extract_strided_slice %193 {offsets = [6, 0, 0], sizes = [2, 8, 8], strides = [1, 1, 1]} : vector<8x8x8xf32> to vector<2x8x8xf32>
    %198 = tpu.concatenate %194, %195, %196, %197 in 2 : vector<2x8x8xf32>, vector<2x8x8xf32>, vector<2x8x8xf32>, vector<2x8x8xf32> -> vector<2x8x32xf32>
    %199 = vector.shape_cast %198 : vector<2x8x32xf32> to vector<16x32xf32>
    %cst_67 = arith.constant dense<0.000000e+00> : vector<16x32xf32>
    %200 = tpu.matmul %199, %149, %cst_67 {dimension_numbers = #tpu.dot_dimension_numbers<[1], [0], [0], [1], [0, 0, 1, 1], [], []>} : vector<16x32xf32>, vector<32x32xf32>, vector<16x32xf32> -> vector<16x32xf32>
    %201 = vector.broadcast %150 : vector<1x32xf32> to vector<16x32xf32>
    %202 = arith.addf %200, %201 : vector<16x32xf32>
    %203 = arith.addf %202, %146 : vector<16x32xf32>
    %cst_68 = arith.constant dense<0.000000e+00> : vector<16xf32>
    %204 = vector.multi_reduction <add>, %203, %cst_68 [1] : vector<16x32xf32> to vector<16xf32>
    %205 = vector.shape_cast %204 : vector<16xf32> to vector<16x1xf32>
    %cst_69 = arith.constant 3.200000e+01 : f32
    %206 = vector.broadcast %cst_69 : f32 to vector<16x1xf32>
    %207 = arith.divf %205, %206 : vector<16x1xf32>
    %208 = vector.broadcast %207 : vector<16x1xf32> to vector<16x32xf32>
    %209 = arith.subf %203, %208 : vector<16x32xf32>
    %210 = arith.mulf %209, %209 : vector<16x32xf32>
    %cst_70 = arith.constant dense<0.000000e+00> : vector<16xf32>
    %211 = vector.multi_reduction <add>, %210, %cst_70 [1] : vector<16x32xf32> to vector<16xf32>
    %212 = vector.shape_cast %211 : vector<16xf32> to vector<16x1xf32>
    %cst_71 = arith.constant 3.200000e+01 : f32
    %213 = vector.broadcast %cst_71 : f32 to vector<16x1xf32>
    %214 = arith.divf %212, %213 : vector<16x1xf32>
    %cst_72 = arith.constant 9.99999996E-13 : f32
    %215 = vector.broadcast %cst_72 : f32 to vector<16x1xf32>
    %216 = arith.addf %214, %215 : vector<16x1xf32>
    %217 = math.rsqrt %216 : vector<16x1xf32>
    %218 = vector.broadcast %217 : vector<16x1xf32> to vector<16x32xf32>
    %219 = arith.mulf %209, %218 : vector<16x32xf32>
    %220 = vector.broadcast %151 : vector<1x32xf32> to vector<16x32xf32>
    %221 = arith.mulf %219, %220 : vector<16x32xf32>
    %222 = vector.broadcast %152 : vector<1x32xf32> to vector<16x32xf32>
    %223 = arith.addf %221, %222 : vector<16x32xf32>
    %cst_73 = arith.constant dense<0.000000e+00> : vector<16x32xf32>
    %224 = tpu.matmul %223, %153, %cst_73 {dimension_numbers = #tpu.dot_dimension_numbers<[1], [0], [0], [1], [0, 0, 1, 1], [], []>} : vector<16x32xf32>, vector<32x32xf32>, vector<16x32xf32> -> vector<16x32xf32>
    %225 = vector.broadcast %154 : vector<1x32xf32> to vector<16x32xf32>
    %226 = arith.addf %224, %225 : vector<16x32xf32>
    %cst_74 = arith.constant 5.000000e-01 : f32
    %227 = vector.broadcast %cst_74 : f32 to vector<16x32xf32>
    %228 = arith.mulf %227, %226 : vector<16x32xf32>
    %cst_75 = arith.constant 0.707106769 : f32
    %229 = vector.broadcast %cst_75 : f32 to vector<16x32xf32>
    %230 = arith.mulf %226, %229 : vector<16x32xf32>
    %231 = math.erf %230 : vector<16x32xf32>
    %cst_76 = arith.constant 1.000000e+00 : f32
    %232 = vector.broadcast %cst_76 : f32 to vector<16x32xf32>
    %233 = arith.addf %232, %231 : vector<16x32xf32>
    %234 = arith.mulf %228, %233 : vector<16x32xf32>
    %cst_77 = arith.constant dense<0.000000e+00> : vector<16x32xf32>
    %235 = tpu.matmul %234, %155, %cst_77 {dimension_numbers = #tpu.dot_dimension_numbers<[1], [0], [0], [1], [0, 0, 1, 1], [], []>} : vector<16x32xf32>, vector<32x32xf32>, vector<16x32xf32> -> vector<16x32xf32>
    %236 = vector.broadcast %156 : vector<1x32xf32> to vector<16x32xf32>
    %237 = arith.addf %235, %236 : vector<16x32xf32>
    %238 = arith.addf %237, %223 : vector<16x32xf32>
    %cst_78 = arith.constant dense<0.000000e+00> : vector<16xf32>
    %239 = vector.multi_reduction <add>, %238, %cst_78 [1] : vector<16x32xf32> to vector<16xf32>
    %240 = vector.shape_cast %239 : vector<16xf32> to vector<16x1xf32>
    %cst_79 = arith.constant 3.200000e+01 : f32
    %241 = vector.broadcast %cst_79 : f32 to vector<16x1xf32>
    %242 = arith.divf %240, %241 : vector<16x1xf32>
    %243 = vector.broadcast %242 : vector<16x1xf32> to vector<16x32xf32>
    %244 = arith.subf %238, %243 : vector<16x32xf32>
    %245 = arith.mulf %244, %244 : vector<16x32xf32>
    %cst_80 = arith.constant dense<0.000000e+00> : vector<16xf32>
    %246 = vector.multi_reduction <add>, %245, %cst_80 [1] : vector<16x32xf32> to vector<16xf32>
    %247 = vector.shape_cast %246 : vector<16xf32> to vector<16x1xf32>
    %cst_81 = arith.constant 3.200000e+01 : f32
    %248 = vector.broadcast %cst_81 : f32 to vector<16x1xf32>
    %249 = arith.divf %247, %248 : vector<16x1xf32>
    %cst_82 = arith.constant 9.99999996E-13 : f32
    %250 = vector.broadcast %cst_82 : f32 to vector<16x1xf32>
    %251 = arith.addf %249, %250 : vector<16x1xf32>
    %252 = math.rsqrt %251 : vector<16x1xf32>
    %253 = vector.broadcast %252 : vector<16x1xf32> to vector<16x32xf32>
    %254 = arith.mulf %244, %253 : vector<16x32xf32>
    %255 = vector.broadcast %157 : vector<1x32xf32> to vector<16x32xf32>
    %256 = arith.mulf %254, %255 : vector<16x32xf32>
    %257 = vector.broadcast %158 : vector<1x32xf32> to vector<16x32xf32>
    %258 = arith.addf %256, %257 : vector<16x32xf32>
    %c416 = arith.constant 416 : index
    %c0_83 = arith.constant 0 : index
    %259 = vector.load %arg2[%c416, %c0_83] : memref<568x128xf32, #tpu.memory_space<vmem>>, vector<32x32xf32>
    %cst_84 = arith.constant dense<0.000000e+00> : vector<16x32xf32>
    %260 = tpu.matmul %258, %259, %cst_84 {dimension_numbers = #tpu.dot_dimension_numbers<[1], [0], [0], [1], [0, 0, 1, 1], [], []>} : vector<16x32xf32>, vector<32x32xf32>, vector<16x32xf32> -> vector<16x32xf32>
    %c448 = arith.constant 448 : index
    %c0_85 = arith.constant 0 : index
    %261 = vector.load %arg2[%c448, %c0_85] : memref<568x128xf32, #tpu.memory_space<vmem>>, vector<1x32xf32>
    %262 = vector.broadcast %261 : vector<1x32xf32> to vector<16x32xf32>
    %263 = arith.addf %260, %262 : vector<16x32xf32>
    %c456 = arith.constant 456 : index
    %c0_86 = arith.constant 0 : index
    %264 = vector.load %arg2[%c456, %c0_86] : memref<568x128xf32, #tpu.memory_space<vmem>>, vector<1x32xf32>
    %c464 = arith.constant 464 : index
    %c0_87 = arith.constant 0 : index
    %265 = vector.load %arg2[%c464, %c0_87] : memref<568x128xf32, #tpu.memory_space<vmem>>, vector<1x32xf32>
    %cst_88 = arith.constant dense<0.000000e+00> : vector<16xf32>
    %266 = vector.multi_reduction <add>, %263, %cst_88 [1] : vector<16x32xf32> to vector<16xf32>
    %267 = vector.shape_cast %266 : vector<16xf32> to vector<16x1xf32>
    %cst_89 = arith.constant 3.200000e+01 : f32
    %268 = vector.broadcast %cst_89 : f32 to vector<16x1xf32>
    %269 = arith.divf %267, %268 : vector<16x1xf32>
    %270 = vector.broadcast %269 : vector<16x1xf32> to vector<16x32xf32>
    %271 = arith.subf %263, %270 : vector<16x32xf32>
    %272 = arith.mulf %271, %271 : vector<16x32xf32>
    %cst_90 = arith.constant dense<0.000000e+00> : vector<16xf32>
    %273 = vector.multi_reduction <add>, %272, %cst_90 [1] : vector<16x32xf32> to vector<16xf32>
    %274 = vector.shape_cast %273 : vector<16xf32> to vector<16x1xf32>
    %cst_91 = arith.constant 3.200000e+01 : f32
    %275 = vector.broadcast %cst_91 : f32 to vector<16x1xf32>
    %276 = arith.divf %274, %275 : vector<16x1xf32>
    %cst_92 = arith.constant 9.99999974E-6 : f32
    %277 = vector.broadcast %cst_92 : f32 to vector<16x1xf32>
    %278 = arith.addf %276, %277 : vector<16x1xf32>
    %279 = math.rsqrt %278 : vector<16x1xf32>
    %280 = vector.broadcast %279 : vector<16x1xf32> to vector<16x32xf32>
    %281 = arith.mulf %271, %280 : vector<16x32xf32>
    %282 = vector.broadcast %264 : vector<1x32xf32> to vector<16x32xf32>
    %283 = arith.mulf %281, %282 : vector<16x32xf32>
    %284 = vector.broadcast %265 : vector<1x32xf32> to vector<16x32xf32>
    %285 = arith.addf %283, %284 : vector<16x32xf32>
    %cst_93 = arith.constant 0.000000e+00 : f32
    %286 = vector.broadcast %cst_93 : f32 to vector<16x32xf32>
    %287 = arith.maximumf %285, %286 : vector<16x32xf32>
    %c472 = arith.constant 472 : index
    %c0_94 = arith.constant 0 : index
    %288 = vector.load %arg2[%c472, %c0_94] : memref<568x128xf32, #tpu.memory_space<vmem>>, vector<32x32xf32>
    %cst_95 = arith.constant dense<0.000000e+00> : vector<16x32xf32>
    %289 = tpu.matmul %287, %288, %cst_95 {dimension_numbers = #tpu.dot_dimension_numbers<[1], [0], [0], [1], [0, 0, 1, 1], [], []>} : vector<16x32xf32>, vector<32x32xf32>, vector<16x32xf32> -> vector<16x32xf32>
    %c504 = arith.constant 504 : index
    %c0_96 = arith.constant 0 : index
    %290 = vector.load %arg2[%c504, %c0_96] : memref<568x128xf32, #tpu.memory_space<vmem>>, vector<1x32xf32>
    %291 = vector.broadcast %290 : vector<1x32xf32> to vector<16x32xf32>
    %292 = arith.addf %289, %291 : vector<16x32xf32>
    %c512 = arith.constant 512 : index
    %c0_97 = arith.constant 0 : index
    %293 = vector.load %arg2[%c512, %c0_97] : memref<568x128xf32, #tpu.memory_space<vmem>>, vector<1x32xf32>
    %c520 = arith.constant 520 : index
    %c0_98 = arith.constant 0 : index
    %294 = vector.load %arg2[%c520, %c0_98] : memref<568x128xf32, #tpu.memory_space<vmem>>, vector<1x32xf32>
    %cst_99 = arith.constant dense<0.000000e+00> : vector<16xf32>
    %295 = vector.multi_reduction <add>, %292, %cst_99 [1] : vector<16x32xf32> to vector<16xf32>
    %296 = vector.shape_cast %295 : vector<16xf32> to vector<16x1xf32>
    %cst_100 = arith.constant 3.200000e+01 : f32
    %297 = vector.broadcast %cst_100 : f32 to vector<16x1xf32>
    %298 = arith.divf %296, %297 : vector<16x1xf32>
    %299 = vector.broadcast %298 : vector<16x1xf32> to vector<16x32xf32>
    %300 = arith.subf %292, %299 : vector<16x32xf32>
    %301 = arith.mulf %300, %300 : vector<16x32xf32>
    %cst_101 = arith.constant dense<0.000000e+00> : vector<16xf32>
    %302 = vector.multi_reduction <add>, %301, %cst_101 [1] : vector<16x32xf32> to vector<16xf32>
    %303 = vector.shape_cast %302 : vector<16xf32> to vector<16x1xf32>
    %cst_102 = arith.constant 3.200000e+01 : f32
    %304 = vector.broadcast %cst_102 : f32 to vector<16x1xf32>
    %305 = arith.divf %303, %304 : vector<16x1xf32>
    %cst_103 = arith.constant 9.99999974E-6 : f32
    %306 = vector.broadcast %cst_103 : f32 to vector<16x1xf32>
    %307 = arith.addf %305, %306 : vector<16x1xf32>
    %308 = math.rsqrt %307 : vector<16x1xf32>
    %309 = vector.broadcast %308 : vector<16x1xf32> to vector<16x32xf32>
    %310 = arith.mulf %300, %309 : vector<16x32xf32>
    %311 = vector.broadcast %293 : vector<1x32xf32> to vector<16x32xf32>
    %312 = arith.mulf %310, %311 : vector<16x32xf32>
    %313 = vector.broadcast %294 : vector<1x32xf32> to vector<16x32xf32>
    %314 = arith.addf %312, %313 : vector<16x32xf32>
    %cst_104 = arith.constant 0.000000e+00 : f32
    %315 = vector.broadcast %cst_104 : f32 to vector<16x32xf32>
    %316 = arith.maximumf %314, %315 : vector<16x32xf32>
    %c528 = arith.constant 528 : index
    %c0_105 = arith.constant 0 : index
    %317 = vector.load %arg2[%c528, %c0_105] : memref<568x128xf32, #tpu.memory_space<vmem>>, vector<32x128xf32>
    %cst_106 = arith.constant dense<0.000000e+00> : vector<16x128xf32>
    %318 = tpu.matmul %316, %317, %cst_106 {dimension_numbers = #tpu.dot_dimension_numbers<[1], [0], [0], [1], [0, 0, 1, 1], [], []>} : vector<16x32xf32>, vector<32x128xf32>, vector<16x128xf32> -> vector<16x128xf32>
    %c560 = arith.constant 560 : index
    %c0_107 = arith.constant 0 : index
    %319 = vector.load %arg2[%c560, %c0_107] : memref<568x128xf32, #tpu.memory_space<vmem>>, vector<1x128xf32>
    %320 = vector.broadcast %319 : vector<1x128xf32> to vector<16x128xf32>
    %321 = arith.addf %318, %320 : vector<16x128xf32>
    %c0_108 = arith.constant 0 : index
    %c0_109 = arith.constant 0 : index
    %322 = vector.load %arg3[%c0_108, %c0_109] : memref<16x128xf32, #tpu.memory_space<vmem>>, vector<16x128xf32>
    tpu.vector_store %arg3[%c0_108, %c0_109], %321 {strides = array<i32>} : memref<16x128xf32, #tpu.memory_space<vmem>>, vector<16x128xf32>,
    return
  }
}

</mosaic_0001>

<bundles_post_ra>
// kernel: tpu_custom_call.1
= control target key start
LH: loop header
LB: loop body
LE: loop exit
PB: predicated region body
PF: predicated region fallthrough
CT: control target
= control target key end

     0   :  { %8 = vsyncpa [#allocation3], 0  ;;  %s2967_s0 = inlined_call_operand.vmem [shape: f32[16,4], index: 0, kind: input, shape index: {}]   ;;  %s2968_s1 = inlined_call_operand.vmem [shape: f32[2,8], index: 1, kind: input, shape index: {}]   ;;  %s2969_s2 = inlined_call_operand.hbm [shape: f32[568,128], index: 2, kind: input, shape index: {}]   ;;  %s2970_s3 = inlined_call_operand.hbm [shape: f32[16,128], index: 3, kind: output, shape index: {}]  }
   0x1   :  { %9 = vsyncpa [#allocation4], 0  ;;  %s18_s14 = sshll.u32 %s2969_s2, 4  ;;  %s2476_s15 = smov [#allocation2]   ;;  %s19_s14 = int_to_ptr.hbm [resolvable:$true] %s18_s14 }
   0x2   :  { %s20_s16 = sshll.u32 %s2476_s15, 4  ;;  %s2477_s17 = smov 128   ;;  %s21_s16 = int_to_ptr.vmem [resolvable:$true] %s20_s16 }
   0x3   :  { %s2478_s18 = smov 8  }
   0x4   :  { %26 = dma.hbm_to_vmem [thread:$0]  %s19_s14, 9088, %s21_s16, [#allocation3], %s2477_s17, %s2477_s17, %s2478_s18  }
   0x5   :  { %2472 = dma.done.wait [#allocation3], 9088  }
   0x6   :  { %2473 = vsyncadd [#allocation3], 4294958208  ;;  %vm48_vm0 = vcmask 1043456   ;;  %vm41_vm1 = vcmask 31744   ;;  %v38_v0 = vld [vmem:[#allocation2] sm:$0xf] }
   0x7   :  { %v36_v1 = vld [vmem:[%s2967_s0] sm:$0xff]  ;;  %v37_v2 = vld [vmem:[%s2967_s0 + $0x8] sm:$0xff]  ;;  %2176 = vmatpush.msk.msra.mxu0 %vm48_vm0, %v38_v0  ;;  %2253 = vmatpush.msk.msra.mxu1 %vm48_vm0, %v38_v0  ;;  %vm77_vm2 = vcmask 261120   ;;  %v2479_v10 = vmov 32.0   ;;  %v138_v27 = vld [vmem:[#allocation2 + $0x38] sm:$0xff]  ;;  %s2480_s0 = smov 104  }
   0x8   :  { %2177 = vmatmul.msk.f32.vlgmr.msra.gmra.mxu0 %vm41_vm1, %v36_v1  ;;  %2178 = vmatmul.msk.f32.vlgmr.msra.gmra.mxu1 %vm41_vm1, %v37_v2  ;;  %v2296_v3 = vld [vmem:[#allocation2 + $0x8] ss:$0 sm:$0xff]  ;;  %2322 = vrcp.f32 %v2479_v10  ;;  %v137_v28 = vld [vmem:[#allocation2 + $0x30] sm:$0xff]  ;;  %v135_v30 = vld [vmem:[#allocation2 + $0x20] sm:$0xff]  ;;  %s2481_s22 = smov 120   ;;  %s2482_s23 = smov 112  }
   0x9   :  { %178 = vmatpush.msrb.mxu1 %v138_v27  ;;  %v136_v29 = vld [vmem:[#allocation2 + $0x28] sm:$0xff]  ;;  %v2297_v45 = vld [vmem:[#allocation2 + $0x10] ss:$0 sm:$0xff]  ;;  %v2298_v49 = vld [vmem:[#allocation2 + $0x18] ss:$0 sm:$0xff]  ;;  %s2483_s24 = smov 96  }
   0xa   :  { %v2299_v59 = vld [vmem:[#allocation2 + $0x40] ss:$0 sm:$0xff]  ;;  %vm205_vm10 = vcmask 64512   ;;  %s2485_s27 = smov 16   ;;  %s2486_s28 = smov 24   ;;  %vm754_vm11 = vcmask 130048  }
   0xb   :  { %179 = vmatpush.msrb.mxu1 %v137_v28  ;;  %vm757_vm12 = vcmask 195584   ;;  %s2487_s29 = smov [#allocation5]   ;;  %s2163_s6 = sshll.u32 %s2970_s3, 4  ;;  %s2164_s6 = int_to_ptr.hbm [resolvable:$true] %s2163_s6 }
   0xc   :  { %s2161_s30 = sshll.u32 %s2487_s29, 4  ;;  %s2162_s30 = int_to_ptr.vmem [resolvable:$true] %s2161_s30 }
   0xd   :  { %180 = vmatpush.msrb.mxu1 %v136_v29 }
   0xe   :  { %v2323_v11 = vpop.eup %2322 }
   0xf   :  { %v85_v12 = vmul.f32 32.0, %v2323_v11  ;;  %vm89_vm3 = vweird.f32 %v2323_v11  ;;  %181 = vmatpush.msrb.mxu1 %v135_v30 }
  0x11   :  { %v86_v13 = vsub.f32 1.0, %v85_v12 }
  0x13   :  { %v87_v14 = vmul.f32 %v2323_v11, %v86_v13 }
  0x15   :  { %v88_v15 = vadd.f32 %v2323_v11, %v87_v14  ;;  %v31_v14 = vld [vmem:[%s2968_s1] sm:$0x3]  ;;  %s2484_s1 = smov 64  }
  0x17   :  { %v2522_v16 = vsel %vm89_vm3, %v2323_v11, %v88_v15  ;;  %v32_v15 = vsub.f32 1.0, %v31_v14 }
  0x85   :  { %v69_v4 = vpop.f32.mrf.mxu0  ;;  %v72_v6 = vpop.f32.mrf.mxu1 }
  0x86   :  { %v70_v5 = vadd.f32 %v2296_v3, %v69_v4  ;;  %v73_v8 = vadd.f32 %v2296_v3, %v72_v6 }
  0x88   :  { %v78_v7 = vsel %vm77_vm2, %v70_v5, 0.0  ;;  %v81_v9 = vsel %vm77_vm2, %v73_v8, 0.0 }
  0x89   :  { %79 = vadd.xlane.f32.xlu0 %v78_v7 }
  0x91   :  { %82 = vadd.xlane.f32.xlu0 %v81_v9 }
  0xfc   :  { %v80_v17 = vpop.xlane.xlu0 %79 }
  0xfd   :  { %v91_v18 = vmul.f32 %v2522_v16, %v80_v17  ;;  %v33_v17 = vmul.f32 -10000.0, %v32_v15 }
  0xff   :  { %v93_v19 = vsub.f32 %v70_v5, %v91_v18  ;;  %v2609_v18 = vperm.slane %v33_v17, 0 }
 0x101   :  { %v95_v20 = vmul.f32 %v93_v19, %v93_v19 }
 0x103   :  { %v97_v21 = vsel %vm77_vm2, %v95_v20, 0.0 }
 0x104   :  { %98 = vadd.xlane.f32.xlu1 %v97_v21  ;;  %v83_v22 = vpop.xlane.xlu0 %82 }
 0x105   :  { %v92_v23 = vmul.f32 %v2522_v16, %v83_v22  ;;  %v35_v22 = vrot.slane %v33_v17, 1 }
 0x107   :  { %v94_v24 = vsub.f32 %v73_v8, %v92_v23 }
 0x109   :  { %v96_v25 = vmul.f32 %v94_v24, %v94_v24 }
 0x10b   :  { %v100_v26 = vsel %vm77_vm2, %v96_v25, 0.0 }
 0x10c   :  { %101 = vadd.xlane.f32.xlu1 %v100_v26 }
 0x177   :  { %v99_v31 = vpop.xlane.xlu1 %98 }
 0x178   :  { %v103_v32 = vmul.f32 %v99_v31, %v2522_v16 }
 0x17a   :  { %v105_v33 = vadd.f32 1e-05, %v103_v32 }
 0x17c   :  { %2324 = vrsqrt.f32 %v105_v33  ;;  %vm113_vm5 = vweird.f32 %v105_v33 }
 0x17f   :  { %v102_v34 = vpop.xlane.xlu1 %101 }
 0x180   :  { %v104_v35 = vmul.f32 %v102_v34, %v2522_v16 }
 0x182   :  { %v2325_v36 = vpop.eup %2324  ;;  %v106_v37 = vadd.f32 1e-05, %v104_v35 }
 0x183   :  { %v108_v38 = vmul.f32 %v2325_v36, %v105_v33  ;;  %vm114_vm4 = vweird.f32 %v2325_v36 }
 0x184   :  { %2326 = vrsqrt.f32 %v106_v37  ;;  %vm115_vm6 = vmor %vm113_vm5, %vm114_vm4  ;;  %vm123_vm8 = vweird.f32 %v106_v37 }
 0x185   :  { %v109_v39 = vmul.f32 %v2325_v36, %v108_v38 }
 0x187   :  { %v110_v40 = vmul.f32 0.5, %v109_v39 }
 0x189   :  { %v111_v41 = vsub.f32 1.5, %v110_v40 }
 0x18a   :  { %v2327_v42 = vpop.eup %2326 }
 0x18b   :  { %v112_v43 = vmul.f32 %v2325_v36, %v111_v41  ;;  %v118_v44 = vmul.f32 %v2327_v42, %v106_v37  ;;  %vm124_vm7 = vweird.f32 %v2327_v42 }
 0x18c   :  { %vm125_vm9 = vmor %vm123_vm8, %vm124_vm7 }
 0x18d   :  { %v116_v46 = vsel %vm115_vm6, %v2325_v36, %v112_v43  ;;  %v119_v47 = vmul.f32 %v2327_v42, %v118_v44 }
 0x18e   :  { %v127_v48 = vmul.f32 %v116_v46, %v93_v19 }
 0x18f   :  { %v120_v50 = vmul.f32 0.5, %v119_v47 }
 0x190   :  { %v130_v51 = vmul.f32 %v2297_v45, %v127_v48 }
 0x191   :  { %v121_v52 = vsub.f32 1.5, %v120_v50 }
 0x192   :  { %v2530_v53 = vadd.f32 %v2298_v49, %v130_v51 }
 0x193   :  { %v122_v54 = vmul.f32 %v2327_v42, %v121_v52 }
 0x194   :  { %2179 = vmatmul.msk.f32.vlgmr.msrb.gmra.mxu1 %vm77_vm2, %v2530_v53 }
 0x195   :  { %v126_v55 = vsel %vm125_vm9, %v2327_v42, %v122_v54 }
 0x196   :  { %v128_v56 = vmul.f32 %v126_v55, %v94_v24  ;;  %v2613_v24 = vperm.slane %v35_v22, 0 }
 0x198   :  { %v131_v57 = vmul.f32 %v2297_v45, %v128_v56 }
 0x19a   :  { %v2534_v58 = vadd.f32 %v2298_v49, %v131_v57 }
 0x19c   :  { %2180 = vmatmul.msk.f32.gmra.mxu1 %vm77_vm2, %v2534_v58 }
 0x211   :  { %v183_v60 = vpop.f32.mrf.mxu1 }
 0x212   :  { %v2538_v61 = vadd.f32 %v2299_v59, %v183_v60 }
 0x214   :  { %199 = vrot.lane.b32.xlu0 %v2538_v61, %s2480_s0  ;;  %191 = vrot.lane.b32.xlu2 %v2538_v61, %s2481_s22 }
 0x215   :  { %195 = vrot.lane.b32.xlu1 %v2538_v61, %s2482_s23 }
 0x219   :  { %v186_v62 = vpop.f32.mrf.mxu1 }
 0x21a   :  { %v2546_v63 = vadd.f32 %v2299_v59, %v186_v62 }
 0x21c   :  { %201 = vrot.lane.b32.xlu0 %v2546_v63, %s2480_s0  ;;  %193 = vrot.lane.b32.xlu2 %v2546_v63, %s2481_s22 }
 0x224   :  { %197 = vrot.lane.b32.xlu2 %v2546_v63, %s2482_s23 }
 0x22c   :  { %203 = vrot.lane.b32.xlu2 %v2538_v61, %s2483_s24 }
 0x234   :  { %230 = vrot.lane.b32.xlu2 %v2546_v63, %s2483_s24 }
 0x26e   :  { %v2558_v0 = vpop.permute.xlu2 %191 }
 0x26f   :  { %256 = vrot.lane.b32.xlu2 %v2558_v0, %s2483_s24 }
 0x276   :  { %v2562_v1 = vpop.permute.xlu2 %193 }
 0x277   :  { %282 = vrot.lane.b32.xlu1 %v2562_v1, %s2483_s24 }
 0x27e   :  { %v2566_v2 = vpop.permute.xlu2 %197 }
 0x27f   :  { %334 = vrot.lane.b32.xlu1 %v2566_v2, %s2483_s24 }
 0x286   :  { %v204_v3 = vpop.permute.xlu2 %203  ;;  %v2570_v4 = vpop.permute.xlu0 %199 }
 0x287   :  { %v2572_v5 = vpop.permute.xlu1 %195  ;;  %2181 = vmatpush.xpose.msk.msra.mxu3 %vm205_vm10, %v204_v3  ;;  %360 = vrot.lane.b32.xlu0 %v2570_v4, %s2483_s24 }
 0x288   :  { %308 = vrot.lane.b32.xlu2 %v2572_v5, %s2483_s24 }
 0x28a   :  { %2182 = vmatmul.msk.f32.vlgmr.msra.gmra.mxu3 %vm205_vm10, %v2538_v61 }
 0x28e   :  { %v231_v6 = vpop.permute.xlu2 %230  ;;  %v2581_v7 = vpop.permute.xlu0 %201 }
 0x28f   :  { %2183 = vmatpush.xpose.msk.msrb.mxu3 %vm205_vm10, %v231_v6  ;;  %386 = vrot.lane.b32.xlu0 %v2581_v7, %s2483_s24 }
 0x292   :  { %2184 = vmatmul.msk.f32.vlgmr.msrb.gmra.mxu3 %vm205_vm10, %v2546_v63 }
 0x2c9   :  { %v257_v8 = vpop.permute.xlu2 %256 }
 0x2ca   :  { %2185 = vmatpush.xpose.msk.msra.mxu2 %vm205_vm10, %v257_v8 }
 0x2cd   :  { %2186 = vmatmul.msk.f32.vlgmr.msra.gmra.mxu2 %vm205_vm10, %v2558_v0 }
 0x2e2   :  { %v309_v9 = vpop.permute.xlu2 %308 }
 0x2e3   :  { %2189 = vmatpush.xpose.msk.msrb.mxu0 %vm205_vm10, %v309_v9 }
 0x2e6   :  { %2190 = vmatmul.msk.f32.vlgmr.msrb.gmra.mxu0 %vm205_vm10, %v2572_v5 }
 0x2e9   :  { %v283_v10 = vpop.permute.xlu1 %282 }
 0x2ea   :  { %2187 = vmatpush.xpose.msk.msra.mxu3 %vm205_vm10, %v283_v10 }
 0x2ed   :  { %2188 = vmatmul.msk.f32.vlgmr.msra.gmra.mxu3 %vm205_vm10, %v2562_v1 }
 0x2f1   :  { %v335_v11 = vpop.permute.xlu1 %334 }
 0x2f2   :  { %2191 = vmatpush.xpose.msk.msrb.mxu2 %vm205_vm10, %v335_v11 }
 0x2f5   :  { %2192 = vmatmul.msk.f32.vlgmr.msrb.gmra.mxu2 %vm205_vm10, %v2566_v2 }
 0x2f9   :  { %v361_v12 = vpop.permute.xlu0 %360 }
 0x2fa   :  { %2193 = vmatpush.xpose.msk.msrb.mxu3 %vm205_vm10, %v361_v12 }
 0x2fd   :  { %2194 = vmatmul.msk.f32.vlgmr.msrb.gmra.mxu3 %vm205_vm10, %v2570_v4 }
 0x301   :  { %v387_v13 = vpop.permute.xlu0 %386 }
 0x302   :  { %2195 = vmatpush.xpose.msk.msra.mxu1 %vm205_vm10, %v387_v13 }
 0x305   :  { %2196 = vmatmul.msk.f32.vlgmr.msra.gmra.mxu1 %vm205_vm10, %v2581_v7 }
 0x30d   :  { %v227_v19 = vpop.f32.mrf.mxu3 }
 0x30e   :  { %v412_v20 = vmul.f32 0.35355338, %v227_v19 }
 0x310   :  { %v424_v21 = vadd.f32 %v2609_v18, %v412_v20 }
 0x312   :  { %v432_v23 = vsel %vm205_vm10, %v424_v21, -inf }
 0x313   :  { %433 = vmax.xlane.f32.xlu1 %v432_v23 }
 0x315   :  { %v253_v25 = vpop.f32.mrf.mxu3 }
 0x316   :  { %v413_v26 = vmul.f32 0.35355338, %v253_v25 }
 0x318   :  { %v425_v27 = vadd.f32 %v2613_v24, %v413_v26 }
 0x31a   :  { %v435_v28 = vsel %vm205_vm10, %v425_v27, -inf }
 0x31b   :  { %436 = vmax.xlane.f32.xlu1 %v435_v28  ;;  %v2266_v28 = vpack.i.bf16 %v2538_v61, %v2558_v0 }
 0x350   :  { %v279_v31 = vpop.f32.mrf.mxu2 }
 0x351   :  { %v414_v33 = vmul.f32 0.35355338, %v279_v31 }
 0x353   :  { %v426_v35 = vadd.f32 %v2609_v18, %v414_v33 }
 0x355   :  { %v438_v37 = vsel %vm205_vm10, %v426_v35, -inf }
 0x363   :  { %v331_v29 = vpop.f32.mrf.mxu0 }
 0x364   :  { %v416_v30 = vmul.f32 0.35355338, %v331_v29  ;;  %v2276_v29 = vpack.i.bf16 %v2562_v1, %v2546_v63 }
 0x366   :  { %v428_v32 = vadd.f32 %v2609_v18, %v416_v30 }
 0x368   :  { %v444_v34 = vsel %vm205_vm10, %v428_v32, -inf }
 0x369   :  { %445 = vmax.xlane.f32.xlu2 %v444_v34 }
 0x370   :  { %v305_v36 = vpop.f32.mrf.mxu3 }
 0x371   :  { %v415_v38 = vmul.f32 0.35355338, %v305_v36  ;;  %439 = vmax.xlane.f32.xlu2 %v438_v37 }
 0x373   :  { %v427_v39 = vadd.f32 %v2613_v24, %v415_v38 }
 0x375   :  { %v441_v40 = vsel %vm205_vm10, %v427_v39, -inf }
 0x376   :  { %442 = vmax.xlane.f32.xlu0 %v441_v40 }
 0x378   :  { %v357_v41 = vpop.f32.mrf.mxu2 }
 0x379   :  { %v417_v42 = vmul.f32 0.35355338, %v357_v41 }
 0x37b   :  { %v429_v43 = vadd.f32 %v2613_v24, %v417_v42 }
 0x37d   :  { %v447_v44 = vsel %vm205_vm10, %v429_v43, -inf }
 0x37e   :  { %448 = vmax.xlane.f32.xlu2 %v447_v44 }
 0x380   :  { %v383_v45 = vpop.f32.mrf.mxu3 }
 0x381   :  { %v418_v46 = vmul.f32 0.35355338, %v383_v45 }
 0x382   :  { %v409_v47 = vpop.f32.mrf.mxu1 }
 0x383   :  { %v419_v48 = vmul.f32 0.35355338, %v409_v47  ;;  %v2626_v49 = vadd.f32 %v2609_v18, %v418_v46 }
 0x385   :  { %v450_v50 = vsel %vm205_vm10, %v2626_v49, -inf  ;;  %v431_v51 = vadd.f32 %v2613_v24, %v419_v48 }
 0x386   :  { %v434_v52 = vpop.xlane.xlu1 %433  ;;  %451 = vmax.xlane.f32.xlu0 %v450_v50 }
 0x387   :  { %v456_v54 = vsub.f32 %v424_v21, %v434_v52  ;;  %v453_v55 = vsel %vm205_vm10, %v431_v51, -inf }
 0x388   :  { %454 = vmax.xlane.f32.xlu1 %v453_v55 }
 0x389   :  { %v464_v56 = vmul.f32 1.442695, %v456_v54 }
 0x38b   :  { %2328 = vpow2.f32 %v464_v56 }
 0x38e   :  { %v437_v57 = vpop.xlane.xlu1 %436 }
 0x38f   :  { %v457_v59 = vsub.f32 %v425_v27, %v437_v57  ;;  %v2271_v27 = vpack.i.bf16 %v2572_v5, %v2570_v4 }
 0x391   :  { %v2632_v60 = vpop.eup %2328  ;;  %v466_v62 = vmul.f32 1.442695, %v457_v59 }
 0x392   :  { %v480_v3 = vsel %vm205_vm10, %v2632_v60, 0.0 }
 0x393   :  { %2330 = vpow2.f32 %v466_v62  ;;  %481 = vadd.xlane.f32.xlu2 %v480_v3 }
 0x399   :  { %v2636_v6 = vpop.eup %2330 }
 0x39a   :  { %v483_v8 = vsel %vm205_vm10, %v2636_v6, 0.0 }
 0x39b   :  { %484 = vadd.xlane.f32.xlu1 %v483_v8 }
 0x3dc   :  { %v446_v9 = vpop.xlane.xlu2 %445 }
 0x3dd   :  { %v460_v10 = vsub.f32 %v428_v32, %v446_v9 }
 0x3df   :  { %v472_v11 = vmul.f32 1.442695, %v460_v10 }
 0x3e1   :  { %2332 = vpow2.f32 %v472_v11 }
 0x3e4   :  { %v440_v12 = vpop.xlane.xlu2 %439 }
 0x3e5   :  { %v458_v13 = vsub.f32 %v426_v35, %v440_v12 }
 0x3e7   :  { %v2640_v14 = vpop.eup %2332  ;;  %v468_v15 = vmul.f32 1.442695, %v458_v13 }
 0x3e8   :  { %v492_v17 = vsel %vm205_vm10, %v2640_v14, 0.0 }
 0x3e9   :  { %2334 = vpow2.f32 %v468_v15  ;;  %493 = vadd.xlane.f32.xlu2 %v492_v17  ;;  %v443_v19 = vpop.xlane.xlu0 %442 }
 0x3ea   :  { %v459_v20 = vsub.f32 %v427_v39, %v443_v19 }
 0x3ec   :  { %v470_v21 = vmul.f32 1.442695, %v459_v20 }
 0x3ee   :  { %2336 = vpow2.f32 %v470_v21 }
 0x3ef   :  { %v2335_v22 = vpop.eup %2334 }
 0x3f0   :  { %v486_v23 = vsel %vm205_vm10, %v2335_v22, 0.0 }
 0x3f1   :  { %487 = vadd.xlane.f32.xlu0 %v486_v23  ;;  %v449_v32 = vpop.xlane.xlu2 %448 }
 0x3f2   :  { %v461_v5 = vsub.f32 %v429_v43, %v449_v32  ;;  %v140_v32 = vld [vmem:[#allocation2 + $0x48] sm:$0xff] }
 0x3f4   :  { %v2645_v25 = vpop.eup %2336  ;;  %v474_v33 = vmul.f32 1.442695, %v461_v5 }
 0x3f5   :  { %v489_v26 = vsel %vm205_vm10, %v2645_v25, 0.0 }
 0x3f6   :  { %490 = vadd.xlane.f32.xlu1 %v489_v26 }
 0x3f9   :  { %v452_v0 = vpop.xlane.xlu0 %451 }
 0x3fa   :  { %v462_v35 = vsub.f32 %v2626_v49, %v452_v0 }
 0x3fb   :  { %v455_v30 = vpop.xlane.xlu1 %454 }
 0x3fc   :  { %v463_v31 = vsub.f32 %v431_v51, %v455_v30  ;;  %v142_v30 = vld [vmem:[#allocation2 + $0x58] sm:$0xff] }
 0x3fe   :  { %v478_v4 = vmul.f32 1.442695, %v463_v31  ;;  %v141_v31 = vld [vmem:[#allocation2 + $0x50] sm:$0xff] }
 0x400   :  { %2338 = vpow2.f32 %v478_v4 }
 0x401   :  { %2272 = vrot.lane.b32.xlu2 %v2271_v27, %s2484_s1  ;;  %2340 = vpow2.f32 %v474_v33 }
 0x405   :  { %2267 = vrot.lane.b32.xlu0 %v2266_v28, %s2484_s1 }
 0x406   :  { %v2660_v34 = vpop.eup %2338  ;;  %v482_v38 = vpop.xlane.xlu2 %481 }
 0x407   :  { %v501_v61 = vsel %vm205_vm10, %v2660_v34, 0.0  ;;  %v2341_v63 = vpop.eup %2340 }
 0x408   :  { %v495_v1 = vsel %vm205_vm10, %v2341_v63, 0.0 }
 0x40e   :  { %v485_v41 = vpop.xlane.xlu1 %484 }
 0x40f   :  { %2277 = vrot.lane.b32.xlu1 %v2276_v29, %s2484_s1  ;;  %v143_v29 = vld [vmem:[#allocation2 + $0x60] sm:$0xff] }
 0x417   :  { %650 = vrot.lane.b32.xlu1 %v2566_v2, %s2484_s1  ;;  %v476_v2 = vmul.f32 1.442695, %v462_v35 }
 0x419   :  { %2342 = vpow2.f32 %v476_v2 }
 0x41a   :  { %2344 = vrcp.f32 %v482_v38  ;;  %v2300_v38 = vld [vmem:[#allocation2 + $0x68] ss:$0 sm:$0xff] }
 0x41f   :  { %v2343_v36 = vpop.eup %2342 }
 0x420   :  { %v498_v37 = vsel %vm205_vm10, %v2343_v36, 0.0  ;;  %v2345_v42 = vpop.eup %2344 }
 0x421   :  { %v512_v49 = vmul.f32 %v2345_v42, %v2632_v60 }
 0x42a   :  { %502 = vadd.xlane.f32.xlu2 %v501_v61 }
 0x42f   :  { %496 = vadd.xlane.f32.xlu0 %v495_v1 }
 0x441   :  { %499 = vadd.xlane.f32.xlu1 %v498_v37 }
 0x45a   :  { %702 = vrot.lane.b32.xlu1 %v2581_v7, %s2484_s1 }
 0x45c   :  { %v494_v39 = vpop.xlane.xlu2 %493 }
 0x464   :  { %v488_v40 = vpop.xlane.xlu0 %487  ;;  %v2273_v44 = vpop.permute.xlu2 %2272 }
 0x465   :  { %2346 = vrcp.f32 %v488_v40  ;;  %v2275_v51 = vunpack.i.h.bf16 %v2273_v44  ;;  %v2274_v7 = vunpack.i.l.bf16 %v2273_v44 }
 0x466   :  { %2348 = vrcp.f32 %v494_v39 }
 0x467   :  { %2350 = vrcp.f32 %v485_v41 }
 0x469   :  { %v491_v45 = vpop.xlane.xlu1 %490 }
 0x46a   :  { %2352 = vrcp.f32 %v491_v45 }
 0x46b   :  { %v2347_v43 = vpop.eup %2346 }
 0x46c   :  { %v514_v50 = vmul.f32 %v2347_v43, %v2335_v22  ;;  %v2349_v52 = vpop.eup %2348 }
 0x46d   :  { %v2351_v54 = vpop.eup %2350  ;;  %v516_v56 = vmul.f32 %v2349_v52, %v2640_v14 }
 0x46e   :  { %v513_v62 = vmul.f32 %v2351_v54, %v2636_v6 }
 0x470   :  { %v2353_v55 = vpop.eup %2352 }
 0x471   :  { %v515_v3 = vmul.f32 %v2353_v55, %v2645_v25 }
 0x477   :  { %v2268_v46 = vpop.permute.xlu0 %2267 }
 0x478   :  { %v2270_v47 = vunpack.i.h.bf16 %v2268_v46  ;;  %v2269_v48 = vunpack.i.l.bf16 %v2268_v46 }
 0x47a   :  { %541 = vmatpush.msra.mxu0 %v2270_v47  ;;  %593 = vmatpush.msra.mxu3 %v2269_v48 }
 0x47b   :  { %2197 = vmatmul.msk.f32.vlgmr.msra.gmra.mxu0 %vm205_vm10, %v512_v49  ;;  %2199 = vmatmul.msk.f32.vlgmr.msra.gmra.mxu3 %vm205_vm10, %v514_v50 }
 0x47c   :  { %645 = vmatpush.msrb.mxu0 %v2275_v51  ;;  %697 = vmatpush.msrb.mxu3 %v2274_v7 }
 0x47e   :  { %779 = vmatpush.msra.mxu0 %v143_v29 }
 0x480   :  { %780 = vmatpush.msra.mxu0 %v142_v30 }
 0x481   :  { %v2278_v57 = vpop.permute.xlu1 %2277 }
 0x482   :  { %v2280_v59 = vunpack.i.h.bf16 %v2278_v57  ;;  %v2279_v60 = vunpack.i.l.bf16 %v2278_v57  ;;  %781 = vmatpush.msra.mxu0 %v141_v31  ;;  %v148_v57 = vld [vmem:[#allocation2 + $0x88] sm:$0xff] }
 0x483   :  { %2201 = vmatmul.msk.f32.vlgmr.msrb.gmra.mxu0 %vm205_vm10, %v516_v56  ;;  %v149_v56 = vld [vmem:[#allocation2 + $0x90] sm:$0xff] }
 0x484   :  { %567 = vmatpush.msra.mxu2 %v2279_v60  ;;  %619 = vmatpush.msrb.mxu1 %v2280_v59  ;;  %v147_v59 = vld [vmem:[#allocation2 + $0x80] sm:$0xff] }
 0x485   :  { %2198 = vmatmul.msk.f32.vlgmr.msra.gmra.mxu2 %vm205_vm10, %v513_v62  ;;  %2200 = vmatmul.msk.f32.vlgmr.msrb.gmra.mxu1 %vm205_vm10, %v515_v3 }
 0x486   :  { %782 = vmatpush.msra.mxu0 %v140_v32 }
 0x489   :  { %v651_v8 = vpop.permute.xlu1 %650 }
 0x48a   :  { %671 = vmatpush.msrb.mxu2 %v651_v8 }
 0x49d   :  { %v503_v14 = vpop.xlane.xlu2 %502 }
 0x4a2   :  { %v497_v9 = vpop.xlane.xlu0 %496 }
 0x4a3   :  { %2354 = vrcp.f32 %v497_v9 }
 0x4a9   :  { %v2355_v10 = vpop.eup %2354 }
 0x4aa   :  { %v517_v11 = vmul.f32 %v2355_v10, %v2341_v63 }
 0x4ac   :  { %2202 = vmatmul.msk.f32.vlgmr.msrb.gmra.mxu2 %vm205_vm10, %v517_v11 }
 0x4b4   :  { %v500_v12 = vpop.xlane.xlu1 %499 }
 0x4b5   :  { %2356 = vrcp.f32 %v500_v12 }
 0x4b6   :  { %2358 = vrcp.f32 %v503_v14 }
 0x4bb   :  { %v2357_v6 = vpop.eup %2356 }
 0x4bc   :  { %v518_v13 = vmul.f32 %v2357_v6, %v2343_v36  ;;  %v2359_v15 = vpop.eup %2358 }
 0x4bd   :  { %v519_v17 = vmul.f32 %v2359_v15, %v2660_v34 }
 0x4be   :  { %2203 = vmatmul.msk.f32.vlgmr.msrb.gmra.mxu3 %vm205_vm10, %v518_v13 }
 0x4cc   :  { %v703_v19 = vpop.permute.xlu1 %702 }
 0x4cd   :  { %723 = vmatpush.msra.mxu1 %v703_v19  ;;  %v2301_v19 = vld [vmem:[#allocation2 + $0x70] ss:$0 sm:$0xff] }
 0x4ce   :  { %2204 = vmatmul.msk.f32.vlgmr.msra.gmra.mxu1 %vm205_vm10, %v519_v17 }
 0x4f8   :  { %v543_v20 = vpop.f32.mrf.mxu0 }
 0x4fe   :  { %v595_v21 = vpop.f32.mrf.mxu3 }
 0x4ff   :  { %730 = vrot.lane.b32.xlu0 %v595_v21, %s2478_s18 }
 0x500   :  { %v647_v22 = vpop.f32.mrf.mxu0 }
 0x501   :  { %738 = vrot.lane.b32.xlu1 %v647_v22, %s2485_s27 }
 0x502   :  { %v621_v23 = vpop.f32.mrf.mxu1 }
 0x503   :  { %732 = vrot.lane.b32.xlu2 %v621_v23, %s2478_s18  ;;  %v2302_v23 = vld [vmem:[#allocation2 + $0x78] ss:$0 sm:$0xff] }
 0x508   :  { %v569_v25 = vpop.f32.mrf.mxu2 }
 0x52f   :  { %v673_v27 = vpop.f32.mrf.mxu2 }
 0x541   :  { %v699_v26 = vpop.f32.mrf.mxu3 }
 0x542   :  { %746 = vrot.lane.b32.xlu1 %v699_v26, %s2486_s28 }
 0x54a   :  { %740 = vrot.lane.b32.xlu1 %v673_v27, %s2485_s27 }
 0x54b   :  { %v725_v28 = vpop.f32.mrf.mxu1 }
 0x54c   :  { %748 = vrot.lane.b32.xlu0 %v725_v28, %s2486_s28 }
 0x55d   :  { %v733_v0 = vpop.permute.xlu2 %732 }
 0x55e   :  { %v753_v1 = vsel %vm205_vm10, %v569_v25, %v733_v0 }
 0x571   :  { %v731_v5 = vpop.permute.xlu0 %730 }
 0x572   :  { %v752_v33 = vsel %vm205_vm10, %v543_v20, %v731_v5 }
 0x573   :  { %v739_v4 = vpop.permute.xlu1 %738 }
 0x574   :  { %v755_v34 = vsel %vm754_vm11, %v752_v33, %v739_v4  ;;  %v2303_v33 = vld [vmem:[#allocation2 + $0xa0] ss:$0 sm:$0xff] }
 0x5b4   :  { %v747_v61 = vpop.permute.xlu1 %746 }
 0x5b5   :  { %v758_v63 = vsel %vm757_vm12, %v755_v34, %v747_v61 }
 0x5b6   :  { %2205 = vmatmul.msk.f32.vlgmr.msra.gmra.mxu0 %vm77_vm2, %v758_v63 }
 0x5bc   :  { %v741_v35 = vpop.permute.xlu1 %740 }
 0x5bd   :  { %v756_v2 = vsel %vm754_vm11, %v753_v1, %v741_v35 }
 0x5be   :  { %v749_v36 = vpop.permute.xlu0 %748 }
 0x5bf   :  { %v759_v37 = vsel %vm757_vm12, %v756_v2, %v749_v36 }
 0x5c0   :  { %2206 = vmatmul.msk.f32.gmra.mxu0 %vm77_vm2, %v759_v37 }
 0x633   :  { %v784_v39 = vpop.f32.mrf.mxu0 }
 0x634   :  { %v785_v40 = vadd.f32 %v2300_v38, %v784_v39 }
 0x636   :  { %v790_v41 = vadd.f32 %v785_v40, %v2530_v53 }
 0x638   :  { %v792_v42 = vsel %vm77_vm2, %v790_v41, 0.0 }
 0x639   :  { %793 = vadd.xlane.f32.xlu1 %v792_v42 }
 0x63d   :  { %v787_v43 = vpop.f32.mrf.mxu0 }
 0x63e   :  { %v788_v44 = vadd.f32 %v2300_v38, %v787_v43 }
 0x640   :  { %v791_v45 = vadd.f32 %v788_v44, %v2534_v58  ;;  %v150_v58 = vld [vmem:[#allocation2 + $0x98] sm:$0xff] }
 0x641   :  { %861 = vmatpush.msra.mxu2 %v150_v58 }
 0x642   :  { %v795_v46 = vsel %vm77_vm2, %v791_v45, 0.0 }
 0x643   :  { %796 = vadd.xlane.f32.xlu0 %v795_v46  ;;  %862 = vmatpush.msra.mxu2 %v149_v56  ;;  %v155_v46 = vld [vmem:[#allocation2 + $0xc0] sm:$0xff]  ;;  %v152_v56 = vld [vmem:[#allocation2 + $0xa8] sm:$0xff] }
 0x644   :  { %979 = vmatpush.msra.mxu3 %v155_v46 }
 0x645   :  { %863 = vmatpush.msra.mxu2 %v148_v57 }
 0x647   :  { %864 = vmatpush.msra.mxu2 %v147_v59 }
 0x6ac   :  { %v794_v47 = vpop.xlane.xlu1 %793 }
 0x6ad   :  { %v798_v48 = vmul.f32 %v794_v47, %v2522_v16 }
 0x6af   :  { %v800_v49 = vsub.f32 %v790_v41, %v798_v48 }
 0x6b1   :  { %v802_v50 = vmul.f32 %v800_v49, %v800_v49 }
 0x6b3   :  { %v804_v51 = vsel %vm77_vm2, %v802_v50, 0.0 }
 0x6b4   :  { %805 = vadd.xlane.f32.xlu2 %v804_v51 }
 0x6b6   :  { %v797_v7 = vpop.xlane.xlu0 %796 }
 0x6b7   :  { %v799_v53 = vmul.f32 %v797_v7, %v2522_v16 }
 0x6b9   :  { %v801_v52 = vsub.f32 %v791_v45, %v799_v53 }
 0x6bb   :  { %v803_v54 = vmul.f32 %v801_v52, %v801_v52 }
 0x6bd   :  { %v807_v55 = vsel %vm77_vm2, %v803_v54, 0.0 }
 0x6be   :  { %808 = vadd.xlane.f32.xlu1 %v807_v55 }
 0x727   :  { %v806_v60 = vpop.xlane.xlu2 %805 }
 0x728   :  { %v810_v62 = vmul.f32 %v806_v60, %v2522_v16 }
 0x72a   :  { %v812_v3 = vadd.f32 1e-12, %v810_v62 }
 0x72c   :  { %2360 = vrsqrt.f32 %v812_v3  ;;  %vm820_vm14 = vweird.f32 %v812_v3 }
 0x731   :  { %v809_v8 = vpop.xlane.xlu1 %808 }
 0x732   :  { %v2361_v9 = vpop.eup %2360  ;;  %v811_v10 = vmul.f32 %v809_v8, %v2522_v16 }
 0x733   :  { %v815_v11 = vmul.f32 %v2361_v9, %v812_v3  ;;  %vm821_vm13 = vweird.f32 %v2361_v9 }
 0x734   :  { %v813_v12 = vadd.f32 1e-12, %v811_v10  ;;  %vm822_vm15 = vmor %vm820_vm14, %vm821_vm13 }
 0x735   :  { %v816_v6 = vmul.f32 %v2361_v9, %v815_v11 }
 0x736   :  { %2362 = vrsqrt.f32 %v813_v12  ;;  %vm830_vm1 = vweird.f32 %v813_v12 }
 0x737   :  { %v817_v13 = vmul.f32 0.5, %v816_v6 }
 0x739   :  { %v818_v14 = vsub.f32 1.5, %v817_v13 }
 0x73b   :  { %v819_v15 = vmul.f32 %v2361_v9, %v818_v14 }
 0x73c   :  { %v2363_v17 = vpop.eup %2362 }
 0x73d   :  { %v823_v20 = vsel %vm822_vm15, %v2361_v9, %v819_v15  ;;  %v825_v21 = vmul.f32 %v2363_v17, %v813_v12  ;;  %vm831_vm0 = vweird.f32 %v2363_v17 }
 0x73e   :  { %v834_v22 = vmul.f32 %v823_v20, %v800_v49  ;;  %vm832_vm3 = vmor %vm830_vm1, %vm831_vm0  ;;  %v154_v49 = vld [vmem:[#allocation2 + $0xb8] sm:$0xff] }
 0x73f   :  { %v826_v25 = vmul.f32 %v2363_v17, %v825_v21  ;;  %980 = vmatpush.msra.mxu3 %v154_v49 }
 0x740   :  { %v837_v26 = vmul.f32 %v2301_v19, %v834_v22 }
 0x741   :  { %v827_v27 = vmul.f32 0.5, %v826_v25 }
 0x742   :  { %v2706_v28 = vadd.f32 %v2302_v23, %v837_v26 }
 0x743   :  { %v828_v29 = vsub.f32 1.5, %v827_v27 }
 0x744   :  { %2207 = vmatmul.msk.f32.vlgmr.msra.gmra.mxu2 %vm77_vm2, %v2706_v28 }
 0x745   :  { %v829_v30 = vmul.f32 %v2363_v17, %v828_v29 }
 0x747   :  { %v833_v31 = vsel %vm832_vm3, %v2363_v17, %v829_v30 }
 0x748   :  { %v835_v32 = vmul.f32 %v833_v31, %v801_v52  ;;  %v153_v52 = vld [vmem:[#allocation2 + $0xb0] sm:$0xff] }
 0x749   :  { %981 = vmatpush.msra.mxu3 %v153_v52 }
 0x74a   :  { %v838_v4 = vmul.f32 %v2301_v19, %v835_v32 }
 0x74b   :  { %982 = vmatpush.msra.mxu3 %v152_v56  ;;  %v2304_v56 = vld [vmem:[#allocation2 + $0xc8] ss:$0 sm:$0xff] }
 0x74c   :  { %v2710_v5 = vadd.f32 %v2302_v23, %v838_v4 }
 0x74e   :  { %2208 = vmatmul.msk.f32.gmra.mxu2 %vm77_vm2, %v2710_v5 }
 0x7c7   :  { %v866_v34 = vpop.f32.mrf.mxu2 }
 0x7c8   :  { %v2714_v61 = vadd.f32 %v2303_v33, %v866_v34 }
 0x7ca   :  { %v2717_v63 = vmul.f32 0.70710677, %v2714_v61 }
 0x7cc   :  { %v876_v0 = vmul.f32 %v2717_v63, %v2717_v63 }
 0x7ce   :  { %v877_v1 = vmin.f32 %v876_v0, 16.0 }
 0x7d0   :  { %v878_v35 = vmul.f32 2.1237322e-06, %v877_v1  ;;  %v889_v2 = vmul.f32 3.8918573e-05, %v877_v1 }
 0x7d1   :  { %v869_v36 = vpop.f32.mrf.mxu2 }
 0x7d2   :  { %v879_v37 = vadd.f32 0.00028619796, %v878_v35  ;;  %v890_v38 = vadd.f32 0.001143296, %v889_v2  ;;  %v2721_v39 = vadd.f32 %v2303_v33, %v869_v36 }
 0x7d4   :  { %v880_v40 = vmul.f32 %v879_v37, %v877_v1  ;;  %v891_v41 = vmul.f32 %v890_v38, %v877_v1  ;;  %v2724_v42 = vmul.f32 0.70710677, %v2721_v39 }
 0x7d6   :  { %v881_v43 = vadd.f32 0.0036580483, %v880_v40  ;;  %v892_v44 = vadd.f32 0.014752088, %v891_v41  ;;  %v916_v45 = vmul.f32 %v2724_v42, %v2724_v42 }
 0x7d8   :  { %v893_v47 = vmul.f32 %v892_v44, %v877_v1  ;;  %v917_v48 = vmin.f32 %v916_v45, 16.0  ;;  %v882_v50 = vmul.f32 %v881_v43, %v877_v1  ;;  %v872_v43 = vmul.f32 0.5, %v2714_v61 }
 0x7da   :  { %v894_v51 = vadd.f32 0.112945676, %v893_v47  ;;  %v918_v7 = vmul.f32 2.1237322e-06, %v917_v48  ;;  %v929_v53 = vmul.f32 3.8918573e-05, %v917_v48 }
 0x7db   :  { %v883_v57 = vadd.f32 0.05243302, %v882_v50 }
 0x7dc   :  { %v895_v54 = vmul.f32 %v894_v51, %v877_v1  ;;  %v919_v55 = vadd.f32 0.00028619796, %v918_v7  ;;  %v930_v58 = vadd.f32 0.001143296, %v929_v53 }
 0x7dd   :  { %v884_v9 = vmul.f32 %v883_v57, %v877_v1 }
 0x7de   :  { %v896_v59 = vadd.f32 0.4994258, %v895_v54  ;;  %v920_v60 = vmul.f32 %v919_v55, %v917_v48  ;;  %v931_v62 = vmul.f32 %v930_v58, %v917_v48  ;;  %v873_v54 = vmul.f32 0.5, %v2721_v39 }
 0x7df   :  { %v885_v13 = vadd.f32 0.18741608, %v884_v9 }
 0x7e0   :  { %v897_v3 = vmul.f32 %v896_v59, %v877_v1  ;;  %v932_v8 = vadd.f32 0.014752088, %v931_v62  ;;  %v921_v11 = vadd.f32 0.0036580483, %v920_v60 }
 0x7e1   :  { %v886_v20 = vmul.f32 %v885_v13, %v877_v1 }
 0x7e2   :  { %v898_v10 = vadd.f32 1.0, %v897_v3  ;;  %v933_v12 = vmul.f32 %v932_v8, %v917_v48  ;;  %v922_v14 = vmul.f32 %v921_v11, %v917_v48 }
 0x7e3   :  { %v887_v27 = vadd.f32 1.1283791, %v886_v20  ;;  %v1043_v20 = vld [vmem:[#allocation2 + $0xe8] sm:$0xff] }
 0x7e4   :  { %2364 = vrcp.f32 %v898_v10  ;;  %v934_v6 = vadd.f32 0.112945676, %v933_v12  ;;  %v923_v21 = vadd.f32 0.05243302, %v922_v14  ;;  %v910_v29 = vand.u32 2147483648, %v898_v10 }
 0x7e5   :  { %v908_v32 = vand.u32 2147483647, %v898_v10  ;;  %vm904_vm5 = vweird.f32 %v898_v10  ;;  %v888_v0 = vmul.f32 %v887_v27, %v2717_v63 }
 0x7e6   :  { %v935_v15 = vmul.f32 %v934_v6, %v917_v48  ;;  %v924_v30 = vmul.f32 %v923_v21, %v917_v48  ;;  %v911_v33 = vor.u32 1.1754944e-38, %v910_v29  ;;  %v1042_v21 = vld [vmem:[#allocation2 + $0xe0] sm:$0xff] }
 0x7e7   :  { %vm909_vm7 = vcmp.eq.f32.partialorder %v908_v32, 8.507059e+37 }
 0x7e8   :  { %v936_v17 = vadd.f32 0.4994258, %v935_v15  ;;  %v925_v34 = vadd.f32 0.18741608, %v924_v30 }
 0x7ea   :  { %v2365_v19 = vpop.eup %2364  ;;  %v937_v23 = vmul.f32 %v936_v17, %v917_v48  ;;  %v926_v37 = vmul.f32 %v925_v34, %v917_v48 }
 0x7eb   :  { %v900_v22 = vmul.f32 %v2365_v19, %v898_v10  ;;  %vm905_vm4 = vweird.f32 %v2365_v19 }
 0x7ec   :  { %v938_v26 = vadd.f32 1.0, %v937_v23  ;;  %vm906_vm6 = vmor %vm904_vm5, %vm905_vm4  ;;  %v927_v46 = vadd.f32 1.1283791, %v926_v37  ;;  %v2306_v37 = vld [vmem:[#allocation2 + $0xd8] ss:$0 sm:$0xff] }
 0x7ed   :  { %v901_v25 = vsub.f32 1.0, %v900_v22 }
 0x7ee   :  { %2366 = vrcp.f32 %v938_v26  ;;  %v950_v45 = vand.u32 2147483648, %v938_v26  ;;  %v948_v49 = vand.u32 2147483647, %v938_v26  ;;  %vm944_vm9 = vweird.f32 %v938_v26 }
 0x7ef   :  { %v902_v31 = vmul.f32 %v2365_v19, %v901_v25  ;;  %v928_v48 = vmul.f32 %v927_v46, %v2724_v42 }
 0x7f0   :  { %v951_v63 = vor.u32 1.1754944e-38, %v950_v45  ;;  %vm949_vm14 = vcmp.eq.f32.partialorder %v948_v49, 8.507059e+37 }
 0x7f1   :  { %v903_v4 = vadd.f32 %v2365_v19, %v902_v31 }
 0x7f3   :  { %v907_v1 = vsel %vm906_vm6, %v2365_v19, %v903_v4  ;;  %v1044_v19 = vld [vmem:[#allocation2 + $0xf0] sm:$0xff] }
 0x7f4   :  { %v912_v35 = vsel %vm909_vm7, %v911_v33, %v907_v1  ;;  %v2367_v2 = vpop.eup %2366 }
 0x7f5   :  { %v913_v36 = vmul.f32 %v912_v35, %v888_v0  ;;  %v940_v38 = vmul.f32 %v2367_v2, %v938_v26  ;;  %vm945_vm8 = vweird.f32 %v2367_v2  ;;  %v2305_v0 = vld [vmem:[#allocation2 + $0xd0] ss:$0 sm:$0xff] }
 0x7f6   :  { %vm946_vm13 = vmor %vm944_vm9, %vm945_vm8 }
 0x7f7   :  { %v2209_v40 = vclamps-f32 %v913_v36, 1.0  ;;  %v941_v41 = vsub.f32 1.0, %v940_v38 }
 0x7f9   :  { %v956_v44 = vadd.f32 1.0, %v2209_v40  ;;  %v942_v47 = vmul.f32 %v2367_v2, %v941_v41 }
 0x7fb   :  { %v958_v50 = vmul.f32 %v956_v44, %v872_v43  ;;  %v943_v51 = vadd.f32 %v2367_v2, %v942_v47 }
 0x7fd   :  { %2211 = vmatmul.msk.f32.vlgmr.msra.gmra.mxu3 %vm77_vm2, %v958_v50  ;;  %v947_v7 = vsel %vm946_vm13, %v2367_v2, %v943_v51  ;;  %v2307_v51 = vld [vmem:[#allocation2 + $0x100] ss:$0 sm:$0xff] }
 0x7fe   :  { %v952_v53 = vsel %vm949_vm14, %v951_v63, %v947_v7 }
 0x7ff   :  { %v953_v52 = vmul.f32 %v952_v53, %v928_v48 }
 0x801   :  { %v2210_v61 = vclamps-f32 %v953_v52, 1.0 }
 0x803   :  { %v957_v55 = vadd.f32 1.0, %v2210_v61 }
 0x805   :  { %v959_v58 = vmul.f32 %v957_v55, %v873_v54 }
 0x807   :  { %2212 = vmatmul.msk.f32.gmra.mxu3 %vm77_vm2, %v959_v58 }
 0x880   :  { %v984_v57 = vpop.f32.mrf.mxu3 }
 0x881   :  { %v985_v59 = vadd.f32 %v2304_v56, %v984_v57 }
 0x883   :  { %v990_v60 = vadd.f32 %v985_v59, %v2706_v28 }
 0x885   :  { %v992_v62 = vsel %vm77_vm2, %v990_v60, 0.0 }
 0x886   :  { %993 = vadd.xlane.f32.xlu0 %v992_v62 }
 0x88a   :  { %v987_v42 = vpop.f32.mrf.mxu3 }
 0x88b   :  { %v988_v3 = vadd.f32 %v2304_v56, %v987_v42 }
 0x88d   :  { %v991_v8 = vadd.f32 %v988_v3, %v2710_v5  ;;  %v1045_v5 = vld [vmem:[#allocation2 + $0xf8] sm:$0xff] }
 0x88e   :  { %1085 = vmatpush.msrb.mxu1 %v1045_v5 }
 0x88f   :  { %v995_v9 = vsel %vm77_vm2, %v991_v8, 0.0 }
 0x890   :  { %996 = vadd.xlane.f32.xlu1 %v995_v9  ;;  %1086 = vmatpush.msrb.mxu1 %v1044_v19 }
 0x892   :  { %1087 = vmatpush.msrb.mxu1 %v1043_v20 }
 0x894   :  { %1088 = vmatpush.msrb.mxu1 %v1042_v21 }
 0x8f9   :  { %v994_v39 = vpop.xlane.xlu0 %993 }
 0x8fa   :  { %v998_v10 = vmul.f32 %v994_v39, %v2522_v16 }
 0x8fc   :  { %v1000_v11 = vsub.f32 %v990_v60, %v998_v10 }
 0x8fe   :  { %v1002_v12 = vmul.f32 %v1000_v11, %v1000_v11 }
 0x900   :  { %v1004_v6 = vsel %vm77_vm2, %v1002_v12, 0.0 }
 0x901   :  { %1005 = vadd.xlane.f32.xlu0 %v1004_v6 }
 0x903   :  { %v997_v13 = vpop.xlane.xlu1 %996 }
 0x904   :  { %v999_v28 = vmul.f32 %v997_v13, %v2522_v16 }
 0x906   :  { %v1001_v14 = vsub.f32 %v991_v8, %v999_v28 }
 0x908   :  { %v1003_v15 = vmul.f32 %v1001_v14, %v1001_v14 }
 0x90a   :  { %v1007_v17 = vsel %vm77_vm2, %v1003_v15, 0.0 }
 0x90b   :  { %1008 = vadd.xlane.f32.xlu2 %v1007_v17 }
 0x974   :  { %v1006_v22 = vpop.xlane.xlu0 %1005 }
 0x975   :  { %v1010_v23 = vmul.f32 %v1006_v22, %v2522_v16 }
 0x977   :  { %v1012_v25 = vadd.f32 1e-12, %v1010_v23 }
 0x979   :  { %2368 = vrsqrt.f32 %v1012_v25  ;;  %vm1020_vm0 = vweird.f32 %v1012_v25 }
 0x97e   :  { %v1009_v27 = vpop.xlane.xlu2 %1008 }
 0x97f   :  { %v2369_v26 = vpop.eup %2368  ;;  %v1011_v30 = vmul.f32 %v1009_v27, %v2522_v16 }
 0x980   :  { %v1015_v29 = vmul.f32 %v2369_v26, %v1012_v25  ;;  %vm1021_vm15 = vweird.f32 %v2369_v26 }
 0x981   :  { %v1013_v32 = vadd.f32 1e-12, %v1011_v30  ;;  %vm1022_vm1 = vmor %vm1020_vm0, %vm1021_vm15 }
 0x982   :  { %v1016_v31 = vmul.f32 %v2369_v26, %v1015_v29 }
 0x983   :  { %2370 = vrsqrt.f32 %v1013_v32  ;;  %vm1030_vm4 = vweird.f32 %v1013_v32 }
 0x984   :  { %v1017_v4 = vmul.f32 0.5, %v1016_v31 }
 0x986   :  { %v1018_v33 = vsub.f32 1.5, %v1017_v4 }
 0x988   :  { %v1019_v34 = vmul.f32 %v2369_v26, %v1018_v33 }
 0x989   :  { %v2371_v1 = vpop.eup %2370 }
 0x98a   :  { %v1023_v35 = vsel %vm1022_vm1, %v2369_v26, %v1019_v34  ;;  %v1025_v36 = vmul.f32 %v2371_v1, %v1013_v32  ;;  %vm1031_vm3 = vweird.f32 %v2371_v1 }
 0x98b   :  { %v1034_v2 = vmul.f32 %v1023_v35, %v1000_v11  ;;  %vm1032_vm5 = vmor %vm1030_vm4, %vm1031_vm3 }
 0x98c   :  { %v1026_v40 = vmul.f32 %v2371_v1, %v1025_v36 }
 0x98d   :  { %v1037_v38 = vmul.f32 %v2305_v0, %v1034_v2 }
 0x98e   :  { %v1027_v41 = vmul.f32 0.5, %v1026_v40 }
 0x98f   :  { %v2744_v43 = vadd.f32 %v2306_v37, %v1037_v38 }
 0x990   :  { %v1028_v44 = vsub.f32 1.5, %v1027_v41 }
 0x991   :  { %2213 = vmatmul.msk.f32.vlgmr.msrb.gmra.mxu1 %vm77_vm2, %v2744_v43 }
 0x992   :  { %v1029_v45 = vmul.f32 %v2371_v1, %v1028_v44 }
 0x994   :  { %v1033_v46 = vsel %vm1032_vm5, %v2371_v1, %v1029_v45 }
 0x995   :  { %v1035_v47 = vmul.f32 %v1033_v46, %v1001_v14 }
 0x997   :  { %v1038_v49 = vmul.f32 %v2305_v0, %v1035_v47 }
 0x999   :  { %v2748_v50 = vadd.f32 %v2306_v37, %v1038_v49 }
 0x99b   :  { %2214 = vmatmul.msk.f32.gmra.mxu1 %vm77_vm2, %v2748_v50 }
 0xa0e   :  { %v1090_v63 = vpop.f32.mrf.mxu1 }
 0xa0f   :  { %v2752_v48 = vadd.f32 %v2307_v51, %v1090_v63 }
 0xa11   :  { %1106 = vrot.lane.b32.xlu0 %v2752_v48, %s2480_s0  ;;  %1098 = vrot.lane.b32.xlu1 %v2752_v48, %s2481_s22 }
 0xa18   :  { %v1093_v7 = vpop.f32.mrf.mxu1 }
 0xa19   :  { %1102 = vrot.lane.b32.xlu0 %v2752_v48, %s2482_s23  ;;  %v2760_v53 = vadd.f32 %v2307_v51, %v1093_v7 }
 0xa1b   :  { %1100 = vrot.lane.b32.xlu1 %v2760_v53, %s2481_s22  ;;  %1104 = vrot.lane.b32.xlu2 %v2760_v53, %s2482_s23 }
 0xa23   :  { %1136 = vrot.lane.b32.xlu1 %v2760_v53, %s2483_s24  ;;  %1108 = vrot.lane.b32.xlu2 %v2760_v53, %s2480_s0 }
 0xa75   :  { %v2770_v52 = vpop.permute.xlu2 %1104 }
 0xa76   :  { %1240 = vrot.lane.b32.xlu1 %v2770_v52, %s2483_s24 }
 0xa7d   :  { %v2774_v61 = vpop.permute.xlu2 %1108 }
 0xa7e   :  { %1292 = vrot.lane.b32.xlu1 %v2774_v61, %s2483_s24 }
 0xa83   :  { %v2778_v54 = vpop.permute.xlu0 %1106  ;;  %v2780_v55 = vpop.permute.xlu1 %1098 }
 0xa84   :  { %1266 = vrot.lane.b32.xlu2 %v2778_v54, %s2483_s24  ;;  %1162 = vrot.lane.b32.xlu0 %v2780_v55, %s2483_s24 }
 0xa8b   :  { %v2786_v58 = vpop.permute.xlu0 %1102 }
 0xa8c   :  { %1214 = vrot.lane.b32.xlu2 %v2786_v58, %s2483_s24  ;;  %1110 = vrot.lane.b32.xlu0 %v2752_v48, %s2483_s24 }
 0xa8d   :  { %v2792_v56 = vpop.permute.xlu1 %1100 }
 0xa94   :  { %1188 = vrot.lane.b32.xlu0 %v2792_v56, %s2483_s24 }
 0xa95   :  { %v1137_v57 = vpop.permute.xlu1 %1136 }
 0xa96   :  { %2217 = vmatpush.xpose.msk.msrb.mxu2 %vm205_vm10, %v1137_v57 }
 0xa99   :  { %2218 = vmatmul.msk.f32.vlgmr.msrb.gmra.mxu2 %vm205_vm10, %v2760_v53 }
 0xade   :  { %v1267_v60 = vpop.permute.xlu2 %1266 }
 0xae6   :  { %v1215_v3 = vpop.permute.xlu2 %1214 }
 0xae8   :  { %v1241_v59 = vpop.permute.xlu1 %1240 }
 0xae9   :  { %2225 = vmatpush.xpose.msk.msra.mxu2 %vm205_vm10, %v1241_v59 }
 0xaec   :  { %2226 = vmatmul.msk.f32.vlgmr.msra.gmra.mxu2 %vm205_vm10, %v2770_v52 }
 0xaf0   :  { %v1293_v9 = vpop.permute.xlu1 %1292 }
 0xaf6   :  { %v1163_v62 = vpop.permute.xlu0 %1162 }
 0xaf7   :  { %2219 = vmatpush.xpose.msk.msrb.mxu3 %vm205_vm10, %v1163_v62 }
 0xafa   :  { %2220 = vmatmul.msk.f32.vlgmr.msrb.gmra.mxu3 %vm205_vm10, %v2780_v55 }
 0xafb   :  { %2227 = vmatpush.xpose.msk.msra.mxu3 %vm205_vm10, %v1267_v60 }
 0xafe   :  { %v1111_v42 = vpop.permute.xlu0 %1110 }
 0xaff   :  { %2215 = vmatpush.xpose.msk.msrb.mxu0 %vm205_vm10, %v1111_v42 }
 0xb02   :  { %2216 = vmatmul.msk.f32.vlgmr.msrb.gmra.mxu0 %vm205_vm10, %v2752_v48  ;;  %2228 = vmatmul.msk.f32.vlgmr.msra.gmra.mxu3 %vm205_vm10, %v2778_v54 }
 0xb03   :  { %2223 = vmatpush.xpose.msk.msra.mxu0 %vm205_vm10, %v1215_v3 }
 0xb06   :  { %v1189_v8 = vpop.permute.xlu0 %1188 }
 0xb07   :  { %2221 = vmatpush.xpose.msk.msra.mxu1 %vm205_vm10, %v1189_v8 }
 0xb0a   :  { %2222 = vmatmul.msk.f32.vlgmr.msra.gmra.mxu1 %vm205_vm10, %v2792_v56  ;;  %2224 = vmatmul.msk.f32.vlgmr.msra.gmra.mxu0 %vm205_vm10, %v2786_v58 }
 0xb0b   :  { %2229 = vmatpush.xpose.msk.msrb.mxu1 %vm205_vm10, %v1293_v9 }
 0xb12   :  { %2230 = vmatmul.msk.f32.vlgmr.msrb.gmra.mxu1 %vm205_vm10, %v2774_v61 }
 0xb1c   :  { %v1159_v39 = vpop.f32.mrf.mxu2 }
 0xb1d   :  { %v1319_v10 = vmul.f32 0.35355338, %v1159_v39 }
 0xb1f   :  { %v1327_v11 = vadd.f32 %v1319_v10, %v2613_v24 }
 0xb21   :  { %v1337_v12 = vsel %vm205_vm10, %v1327_v11, -inf }
 0xb22   :  { %1338 = vmax.xlane.f32.xlu1 %v1337_v12 }
 0xb6f   :  { %v1263_v21 = vpop.f32.mrf.mxu2 }
 0xb70   :  { %v1323_v30 = vmul.f32 0.35355338, %v1263_v21 }
 0xb72   :  { %v1331_v0 = vadd.f32 %v1323_v30, %v2613_v24  ;;  %v2291_v30 = vpack.i.bf16 %v2792_v56, %v2786_v58 }
 0xb74   :  { %v1349_v2 = vsel %vm205_vm10, %v1331_v0, -inf }
 0xb7d   :  { %v1185_v6 = vpop.f32.mrf.mxu3 }
 0xb7e   :  { %v1320_v13 = vmul.f32 0.35355338, %v1185_v6 }
 0xb7f   :  { %v1133_v28 = vpop.f32.mrf.mxu0 }
 0xb80   :  { %v1318_v14 = vmul.f32 0.35355338, %v1133_v28  ;;  %v1328_v15 = vadd.f32 %v1320_v13, %v2609_v18 }
 0xb82   :  { %v1340_v17 = vsel %vm205_vm10, %v1328_v15, -inf  ;;  %v1326_v5 = vadd.f32 %v1318_v14, %v2609_v18 }
 0xb83   :  { %1341 = vmax.xlane.f32.xlu2 %v1340_v17 }
 0xb84   :  { %v1334_v19 = vsel %vm205_vm10, %v1326_v5, -inf }
 0xb85   :  { %v1289_v20 = vpop.f32.mrf.mxu3  ;;  %1335 = vmax.xlane.f32.xlu0 %v1334_v19 }
 0xb86   :  { %v1324_v22 = vmul.f32 0.35355338, %v1289_v20 }
 0xb87   :  { %v1211_v23 = vpop.f32.mrf.mxu1  ;;  %v1237_v25 = vpop.f32.mrf.mxu0 }
 0xb88   :  { %v1321_v26 = vmul.f32 0.35355338, %v1211_v23  ;;  %v1322_v27 = vmul.f32 0.35355338, %v1237_v25  ;;  %v1332_v29 = vadd.f32 %v1324_v22, %v2609_v18 }
 0xb8a   :  { %v1352_v31 = vsel %vm205_vm10, %v1332_v29, -inf  ;;  %v1330_v32 = vadd.f32 %v1322_v27, %v2609_v18  ;;  %v1329_v4 = vadd.f32 %v1321_v26, %v2613_v24  ;;  %v2281_v27 = vpack.i.bf16 %v2752_v48, %v2780_v55 }
 0xb8b   :  { %1353 = vmax.xlane.f32.xlu2 %v1352_v31  ;;  %v2286_v31 = vpack.i.bf16 %v2778_v54, %v2760_v53 }
 0xb8c   :  { %v1346_v33 = vsel %vm205_vm10, %v1330_v32, -inf  ;;  %v1343_v34 = vsel %vm205_vm10, %v1329_v4, -inf }
 0xb8d   :  { %1347 = vmax.xlane.f32.xlu0 %v1346_v33  ;;  %1344 = vmax.xlane.f32.xlu1 %v1343_v34 }
 0xb8f   :  { %v1315_v1 = vpop.f32.mrf.mxu1 }
 0xb90   :  { %v1325_v35 = vmul.f32 0.35355338, %v1315_v1 }
 0xb92   :  { %v1333_v36 = vadd.f32 %v1325_v35, %v2613_v24 }
 0xb93   :  { %1350 = vmax.xlane.f32.xlu2 %v1349_v2 }
 0xb94   :  { %v1355_v18 = vsel %vm205_vm10, %v1333_v36, -inf }
 0xb95   :  { %1356 = vmax.xlane.f32.xlu0 %v1355_v18  ;;  %v1339_v37 = vpop.xlane.xlu1 %1338 }
 0xb96   :  { %v1359_v38 = vsub.f32 %v1327_v11, %v1339_v37 }
 0xb98   :  { %v1368_v40 = vmul.f32 1.442695, %v1359_v38 }
 0xb9a   :  { %2372 = vpow2.f32 %v1368_v40 }
 0xba0   :  { %v2836_v41 = vpop.eup %2372 }
 0xba1   :  { %v1385_v44 = vsel %vm205_vm10, %v2836_v41, 0.0 }
 0xba2   :  { %1386 = vadd.xlane.f32.xlu0 %v1385_v44 }
 0xbf6   :  { %v1342_v45 = vpop.xlane.xlu2 %1341 }
 0xbf7   :  { %v1360_v46 = vsub.f32 %v1328_v15, %v1342_v45 }
 0xbf8   :  { %v1336_v47 = vpop.xlane.xlu0 %1335 }
 0xbf9   :  { %v1370_v49 = vmul.f32 1.442695, %v1360_v46  ;;  %v1358_v51 = vsub.f32 %v1326_v5, %v1336_v47 }
 0xbfb   :  { %2374 = vpow2.f32 %v1370_v49  ;;  %v1366_v24 = vmul.f32 1.442695, %v1358_v51 }
 0xbfd   :  { %2376 = vpow2.f32 %v1366_v24 }
 0xbfe   :  { %v1354_v63 = vpop.xlane.xlu2 %1353 }
 0xbff   :  { %v1364_v39 = vsub.f32 %v1332_v29, %v1354_v63 }
 0xc00   :  { %v1348_v7 = vpop.xlane.xlu0 %1347  ;;  %v1345_v57 = vpop.xlane.xlu1 %1344 }
 0xc01   :  { %v2375_v59 = vpop.eup %2374  ;;  %v1362_v60 = vsub.f32 %v1330_v32, %v1348_v7  ;;  %v1361_v62 = vsub.f32 %v1329_v4, %v1345_v57  ;;  %v1378_v6 = vmul.f32 1.442695, %v1364_v39 }
 0xc02   :  { %v1388_v42 = vsel %vm205_vm10, %v2375_v59, 0.0 }
 0xc03   :  { %v2377_v3 = vpop.eup %2376  ;;  %v1374_v8 = vmul.f32 1.442695, %v1362_v60  ;;  %v1372_v9 = vmul.f32 1.442695, %v1361_v62  ;;  %1389 = vadd.xlane.f32.xlu1 %v1388_v42 }
 0xc04   :  { %v1382_v10 = vsel %vm205_vm10, %v2377_v3, 0.0 }
 0xc05   :  { %2378 = vpow2.f32 %v1374_v8  ;;  %1383 = vadd.xlane.f32.xlu2 %v1382_v10 }
 0xc06   :  { %2380 = vpow2.f32 %v1372_v9  ;;  %v1351_v11 = vpop.xlane.xlu2 %1350 }
 0xc07   :  { %v1363_v12 = vsub.f32 %v1331_v0, %v1351_v11 }
 0xc08   :  { %v1357_v13 = vpop.xlane.xlu0 %1356 }
 0xc09   :  { %v1376_v28 = vmul.f32 1.442695, %v1363_v12  ;;  %v1365_v15 = vsub.f32 %v1333_v36, %v1357_v13  ;;  %v1049_v13 = vld [vmem:[#allocation2 + $0x118] sm:$0xff] }
 0xc0b   :  { %v2379_v14 = vpop.eup %2378  ;;  %2382 = vpow2.f32 %v1376_v28  ;;  %v1380_v20 = vmul.f32 1.442695, %v1365_v15  ;;  %v1048_v28 = vld [vmem:[#allocation2 + $0x110] sm:$0xff] }
 0xc0c   :  { %v2381_v17 = vpop.eup %2380  ;;  %2384 = vpow2.f32 %v1378_v6  ;;  %v1394_v5 = vsel %vm205_vm10, %v2379_v14, 0.0  ;;  %v1050_v6 = vld [vmem:[#allocation2 + $0x120] sm:$0xff] }
 0xc0d   :  { %1395 = vadd.xlane.f32.xlu0 %v1394_v5  ;;  %v1391_v19 = vsel %vm205_vm10, %v2381_v17, 0.0  ;;  %2386 = vpow2.f32 %v1380_v20 }
 0xc0e   :  { %1392 = vadd.xlane.f32.xlu1 %v1391_v19 }
 0xc11   :  { %v2844_v21 = vpop.eup %2382 }
 0xc12   :  { %v2846_v22 = vpop.eup %2384  ;;  %v1397_v23 = vsel %vm205_vm10, %v2844_v21, 0.0 }
 0xc13   :  { %v1400_v25 = vsel %vm205_vm10, %v2846_v22, 0.0  ;;  %v2387_v26 = vpop.eup %2386 }
 0xc14   :  { %v1403_v29 = vsel %vm205_vm10, %v2387_v26, 0.0 }
 0xc15   :  { %1398 = vadd.xlane.f32.xlu0 %v1397_v23  ;;  %v1387_v55 = vpop.xlane.xlu0 %1386 }
 0xc16   :  { %1401 = vadd.xlane.f32.xlu1 %v1400_v25 }
 0xc1d   :  { %2282 = vrot.lane.b32.xlu2 %v2281_v27, %s2484_s1  ;;  %1404 = vadd.xlane.f32.xlu0 %v1403_v29 }
 0xc25   :  { %2292 = vrot.lane.b32.xlu2 %v2291_v30, %s2484_s1  ;;  %v2308_v30 = vld [vmem:[#allocation2 + $0x128] ss:$0 sm:$0xff] }
 0xc2d   :  { %1604 = vrot.lane.b32.xlu2 %v2774_v61, %s2484_s1 }
 0xc2f   :  { %2287 = vrot.lane.b32.xlu1 %v2286_v31, %s2484_s1 }
 0xc31   :  { %1552 = vrot.lane.b32.xlu0 %v2770_v52, %s2484_s1 }
 0xc76   :  { %v1390_v48 = vpop.xlane.xlu1 %1389 }
 0xc77   :  { %2388 = vrcp.f32 %v1390_v48 }
 0xc78   :  { %v1384_v32 = vpop.xlane.xlu2 %1383 }
 0xc79   :  { %2390 = vrcp.f32 %v1384_v32 }
 0xc7d   :  { %v2389_v4 = vpop.eup %2388 }
 0xc7e   :  { %v1416_v54 = vmul.f32 %v2389_v4, %v2375_v59 }
 0xc7f   :  { %v2391_v58 = vpop.eup %2390 }
 0xc80   :  { %v2283_v56 = vpop.permute.xlu2 %2282  ;;  %v1396_v33 = vpop.xlane.xlu0 %1395  ;;  %v1414_v61 = vmul.f32 %v2391_v58, %v2377_v3 }
 0xc81   :  { %v2285_v34 = vunpack.i.h.bf16 %v2283_v56  ;;  %v2284_v0 = vunpack.i.l.bf16 %v2283_v56  ;;  %2392 = vrcp.f32 %v1396_v33  ;;  %v1393_v53 = vpop.xlane.xlu1 %1392 }
 0xc82   :  { %2394 = vrcp.f32 %v1393_v53 }
 0xc83   :  { %1443 = vmatpush.msrb.mxu0 %v2285_v34  ;;  %1495 = vmatpush.msrb.mxu3 %v2284_v0 }
 0xc84   :  { %2231 = vmatmul.msk.f32.vlgmr.msrb.gmra.mxu0 %vm205_vm10, %v1414_v61  ;;  %2233 = vmatmul.msk.f32.vlgmr.msrb.gmra.mxu3 %vm205_vm10, %v1416_v54 }
 0xc87   :  { %v2393_v52 = vpop.eup %2392 }
 0xc88   :  { %v2395_v1 = vpop.eup %2394  ;;  %v2293_v35 = vpop.permute.xlu2 %2292  ;;  %v1418_v37 = vmul.f32 %v2393_v52, %v2379_v14  ;;  %v1047_v14 = vld [vmem:[#allocation2 + $0x108] sm:$0xff] }
 0xc89   :  { %v1399_v2 = vpop.xlane.xlu0 %1398  ;;  %v2295_v36 = vunpack.i.h.bf16 %v2293_v35  ;;  %v2294_v18 = vunpack.i.l.bf16 %v2293_v35  ;;  %v1417_v38 = vmul.f32 %v2395_v1, %v2381_v17  ;;  %v1402_v46 = vpop.xlane.xlu1 %1401 }
 0xc8b   :  { %1521 = vmatpush.msra.mxu1 %v2295_v36  ;;  %1547 = vmatpush.msra.mxu0 %v2294_v18  ;;  %v1056_v36 = vld [vmem:[#allocation2 + $0x150] sm:$0xff]  ;;  %v1055_v18 = vld [vmem:[#allocation2 + $0x148] sm:$0xff] }
 0xc8c   :  { %2234 = vmatmul.msk.f32.vlgmr.msra.gmra.mxu1 %vm205_vm10, %v1417_v38  ;;  %2235 = vmatmul.msk.f32.vlgmr.msra.gmra.mxu0 %vm205_vm10, %v1418_v37  ;;  %v1054_v37 = vld [vmem:[#allocation2 + $0x140] sm:$0xff] }
 0xc8d   :  { %1679 = vmatpush.msrb.mxu0 %v1050_v6 }
 0xc8f   :  { %1680 = vmatpush.msrb.mxu0 %v1049_v13 }
 0xc90   :  { %v1605_v40 = vpop.permute.xlu2 %1604 }
 0xc91   :  { %v1405_v44 = vpop.xlane.xlu0 %1404  ;;  %1625 = vmatpush.msrb.mxu1 %v1605_v40  ;;  %1681 = vmatpush.msrb.mxu0 %v1048_v28 }
 0xc92   :  { %2396 = vrcp.f32 %v1405_v44 }
 0xc93   :  { %2398 = vrcp.f32 %v1387_v55  ;;  %1682 = vmatpush.msrb.mxu0 %v1047_v14 }
 0xc94   :  { %2400 = vrcp.f32 %v1402_v46 }
 0xc95   :  { %2402 = vrcp.f32 %v1399_v2 }
 0xc98   :  { %v2397_v45 = vpop.eup %2396 }
 0xc99   :  { %v1421_v47 = vmul.f32 %v2397_v45, %v2387_v26  ;;  %v2399_v49 = vpop.eup %2398 }
 0xc9a   :  { %v2401_v51 = vpop.eup %2400  ;;  %v1415_v57 = vmul.f32 %v2399_v49, %v2836_v41 }
 0xc9b   :  { %2238 = vmatmul.msk.f32.vlgmr.msrb.gmra.mxu1 %vm205_vm10, %v1421_v47  ;;  %v1420_v59 = vmul.f32 %v2401_v51, %v2846_v22  ;;  %v2403_v62 = vpop.eup %2402 }
 0xc9c   :  { %v1419_v42 = vmul.f32 %v2403_v62, %v2844_v21  ;;  %v2309_v62 = vld [vmem:[#allocation2 + $0x130] ss:$0 sm:$0xff] }
 0xca1   :  { %v2288_v24 = vpop.permute.xlu1 %2287 }
 0xca2   :  { %v2290_v63 = vunpack.i.h.bf16 %v2288_v24  ;;  %v2289_v7 = vunpack.i.l.bf16 %v2288_v24 }
 0xca3   :  { %v1553_v60 = vpop.permute.xlu0 %1552 }
 0xca4   :  { %1469 = vmatpush.msrb.mxu2 %v2289_v7  ;;  %1599 = vmatpush.msra.mxu3 %v2290_v63 }
 0xca5   :  { %2232 = vmatmul.msk.f32.vlgmr.msrb.gmra.mxu2 %vm205_vm10, %v1415_v57  ;;  %2237 = vmatmul.msk.f32.vlgmr.msra.gmra.mxu3 %vm205_vm10, %v1420_v59 }
 0xca6   :  { %1573 = vmatpush.msra.mxu2 %v1553_v60 }
 0xcad   :  { %2236 = vmatmul.msk.f32.vlgmr.msra.gmra.mxu2 %vm205_vm10, %v1419_v42 }
 0xd01   :  { %v1445_v3 = vpop.f32.mrf.mxu0 }
 0xd07   :  { %v1497_v8 = vpop.f32.mrf.mxu3 }
 0xd08   :  { %1632 = vrot.lane.b32.xlu1 %v1497_v8, %s2478_s18 }
 0xd09   :  { %v1523_v41 = vpop.f32.mrf.mxu1  ;;  %v1549_v9 = vpop.f32.mrf.mxu0 }
 0xd0a   :  { %1640 = vrot.lane.b32.xlu2 %v1549_v9, %s2485_s27  ;;  %1634 = vrot.lane.b32.xlu0 %v1523_v41, %s2478_s18  ;;  %v2310_v41 = vld [vmem:[#allocation2 + $0x138] ss:$0 sm:$0xff] }
 0xd18   :  { %v1627_v11 = vpop.f32.mrf.mxu1 }
 0xd28   :  { %v1471_v39 = vpop.f32.mrf.mxu2  ;;  %v1601_v10 = vpop.f32.mrf.mxu3 }
 0xd29   :  { %1648 = vrot.lane.b32.xlu1 %v1601_v10, %s2486_s28 }
 0xd30   :  { %v1575_v12 = vpop.f32.mrf.mxu2 }
 0xd31   :  { %1650 = vrot.lane.b32.xlu1 %v1627_v11, %s2486_s28  ;;  %1642 = vrot.lane.b32.xlu2 %v1575_v12, %s2485_s27 }
 0xd64   :  { %v1641_v17 = vpop.permute.xlu2 %1640 }
 0xd7a   :  { %v1633_v15 = vpop.permute.xlu1 %1632 }
 0xd7b   :  { %v1654_v5 = vsel %vm205_vm10, %v1445_v3, %v1633_v15  ;;  %v2311_v15 = vld [vmem:[#allocation2 + $0x160] ss:$0 sm:$0xff] }
 0xd7c   :  { %v1656_v19 = vsel %vm754_vm11, %v1654_v5, %v1641_v17  ;;  %v1635_v22 = vpop.permute.xlu0 %1634 }
 0xd7d   :  { %v1655_v25 = vsel %vm205_vm10, %v1471_v39, %v1635_v22 }
 0xd8b   :  { %v1643_v23 = vpop.permute.xlu2 %1642 }
 0xd8c   :  { %v1657_v26 = vsel %vm754_vm11, %v1655_v25, %v1643_v23 }
 0xd9b   :  { %v1649_v20 = vpop.permute.xlu1 %1648 }
 0xd9c   :  { %v1658_v21 = vsel %vm757_vm12, %v1656_v19, %v1649_v20 }
 0xd9d   :  { %2239 = vmatmul.msk.f32.vlgmr.msrb.gmra.mxu0 %vm77_vm2, %v1658_v21 }
 0xda3   :  { %v1651_v27 = vpop.permute.xlu1 %1650 }
 0xda4   :  { %v1659_v29 = vsel %vm757_vm12, %v1657_v26, %v1651_v27 }
 0xda5   :  { %2240 = vmatmul.msk.f32.gmra.mxu0 %vm77_vm2, %v1659_v29 }
 0xe1a   :  { %v1684_v31 = vpop.f32.mrf.mxu0 }
 0xe1b   :  { %v1685_v48 = vadd.f32 %v2308_v30, %v1684_v31 }
 0xe1d   :  { %v1690_v55 = vadd.f32 %v1685_v48, %v2744_v43 }
 0xe1f   :  { %v1692_v32 = vsel %vm77_vm2, %v1690_v55, 0.0 }
 0xe20   :  { %1693 = vadd.xlane.f32.xlu0 %v1692_v32 }
 0xe22   :  { %v1687_v4 = vpop.f32.mrf.mxu0 }
 0xe23   :  { %v1688_v58 = vadd.f32 %v2308_v30, %v1687_v4 }
 0xe25   :  { %v1691_v56 = vadd.f32 %v1688_v58, %v2748_v50  ;;  %v1057_v50 = vld [vmem:[#allocation2 + $0x158] sm:$0xff] }
 0xe26   :  { %1761 = vmatpush.msrb.mxu2 %v1057_v50 }
 0xe27   :  { %v1695_v33 = vsel %vm77_vm2, %v1691_v56, 0.0 }
 0xe28   :  { %1696 = vadd.xlane.f32.xlu2 %v1695_v33  ;;  %1762 = vmatpush.msrb.mxu2 %v1056_v36  ;;  %v1059_v36 = vld [vmem:[#allocation2 + $0x168] sm:$0xff] }
 0xe2a   :  { %1763 = vmatpush.msrb.mxu2 %v1055_v18 }
 0xe2c   :  { %1764 = vmatpush.msrb.mxu2 %v1054_v37 }
 0xe93   :  { %v1694_v34 = vpop.xlane.xlu0 %1693 }
 0xe94   :  { %v1698_v0 = vmul.f32 %v1694_v34, %v2522_v16 }
 0xe96   :  { %v1700_v53 = vsub.f32 %v1690_v55, %v1698_v0 }
 0xe98   :  { %v1702_v54 = vmul.f32 %v1700_v53, %v1700_v53 }
 0xe9a   :  { %v1704_v61 = vsel %vm77_vm2, %v1702_v54, 0.0 }
 0xe9b   :  { %1705 = vadd.xlane.f32.xlu1 %v1704_v61  ;;  %v1697_v52 = vpop.xlane.xlu2 %1696 }
 0xe9c   :  { %v1699_v43 = vmul.f32 %v1697_v52, %v2522_v16 }
 0xe9e   :  { %v1701_v1 = vsub.f32 %v1691_v56, %v1699_v43  ;;  %v1062_v56 = vld [vmem:[#allocation2 + $0x180] sm:$0xff] }
 0xe9f   :  { %1879 = vmatpush.msrb.mxu3 %v1062_v56 }
 0xea0   :  { %v1703_v35 = vmul.f32 %v1701_v1, %v1701_v1 }
 0xea2   :  { %v1707_v2 = vsel %vm77_vm2, %v1703_v35, 0.0 }
 0xea3   :  { %1708 = vadd.xlane.f32.xlu2 %v1707_v2 }
 0xf0e   :  { %v1706_v38 = vpop.xlane.xlu1 %1705 }
 0xf0f   :  { %v1710_v40 = vmul.f32 %v1706_v38, %v2522_v16 }
 0xf11   :  { %v1712_v44 = vadd.f32 1e-12, %v1710_v40 }
 0xf13   :  { %2404 = vrsqrt.f32 %v1712_v44  ;;  %vm1720_vm11 = vweird.f32 %v1712_v44 }
 0xf16   :  { %v1709_v45 = vpop.xlane.xlu2 %1708 }
 0xf17   :  { %v1711_v46 = vmul.f32 %v1709_v45, %v2522_v16 }
 0xf19   :  { %v2405_v47 = vpop.eup %2404  ;;  %v1713_v49 = vadd.f32 1e-12, %v1711_v46 }
 0xf1a   :  { %v1715_v51 = vmul.f32 %v2405_v47, %v1712_v44  ;;  %vm1721_vm10 = vweird.f32 %v2405_v47 }
 0xf1b   :  { %2406 = vrsqrt.f32 %v1713_v49  ;;  %vm1722_vm12 = vmor %vm1720_vm11, %vm1721_vm10  ;;  %vm1730_vm7 = vweird.f32 %v1713_v49 }
 0xf1c   :  { %v1716_v24 = vmul.f32 %v2405_v47, %v1715_v51 }
 0xf1e   :  { %v1717_v63 = vmul.f32 0.5, %v1716_v24 }
 0xf20   :  { %v1718_v7 = vsub.f32 1.5, %v1717_v63 }
 0xf21   :  { %v2407_v57 = vpop.eup %2406 }
 0xf22   :  { %v1719_v59 = vmul.f32 %v2405_v47, %v1718_v7  ;;  %v1725_v60 = vmul.f32 %v2407_v57, %v1713_v49  ;;  %vm1731_vm6 = vweird.f32 %v2407_v57 }
 0xf23   :  { %vm1732_vm8 = vmor %vm1730_vm7, %vm1731_vm6 }
 0xf24   :  { %v1723_v42 = vsel %vm1722_vm12, %v2405_v47, %v1719_v59  ;;  %v1726_v3 = vmul.f32 %v2407_v57, %v1725_v60 }
 0xf25   :  { %v1734_v8 = vmul.f32 %v1723_v42, %v1700_v53  ;;  %v1061_v53 = vld [vmem:[#allocation2 + $0x178] sm:$0xff] }
 0xf26   :  { %v1727_v9 = vmul.f32 0.5, %v1726_v3  ;;  %1880 = vmatpush.msrb.mxu3 %v1061_v53 }
 0xf27   :  { %v1737_v39 = vmul.f32 %v2309_v62, %v1734_v8 }
 0xf28   :  { %v1728_v10 = vsub.f32 1.5, %v1727_v9 }
 0xf29   :  { %v2901_v11 = vadd.f32 %v2310_v41, %v1737_v39 }
 0xf2a   :  { %v1729_v12 = vmul.f32 %v2407_v57, %v1728_v10 }
 0xf2b   :  { %2241 = vmatmul.msk.f32.vlgmr.msrb.gmra.mxu2 %vm77_vm2, %v2901_v11 }
 0xf2c   :  { %v1733_v6 = vsel %vm1732_vm8, %v2407_v57, %v1729_v12 }
 0xf2d   :  { %v1735_v13 = vmul.f32 %v1733_v6, %v1701_v1  ;;  %v1060_v1 = vld [vmem:[#allocation2 + $0x170] sm:$0xff] }
 0xf2e   :  { %1881 = vmatpush.msrb.mxu3 %v1060_v1 }
 0xf2f   :  { %v1738_v28 = vmul.f32 %v2309_v62, %v1735_v13 }
 0xf30   :  { %1882 = vmatpush.msrb.mxu3 %v1059_v36 }
 0xf31   :  { %v2905_v14 = vadd.f32 %v2310_v41, %v1738_v28 }
 0xf33   :  { %2242 = vmatmul.msk.f32.gmra.mxu2 %vm77_vm2, %v2905_v14 }
 0xfae   :  { %v1766_v17 = vpop.f32.mrf.mxu2 }
 0xfaf   :  { %v2909_v5 = vadd.f32 %v2311_v15, %v1766_v17 }
 0xfb1   :  { %v2912_v19 = vmul.f32 0.70710677, %v2909_v5 }
 0xfb3   :  { %v1776_v20 = vmul.f32 %v2912_v19, %v2912_v19 }
 0xfb5   :  { %v1777_v21 = vmin.f32 %v1776_v20, 16.0 }
 0xfb6   :  { %v1769_v22 = vpop.f32.mrf.mxu2 }
 0xfb7   :  { %v1778_v23 = vmul.f32 2.1237322e-06, %v1777_v21  ;;  %v1789_v25 = vmul.f32 3.8918573e-05, %v1777_v21  ;;  %v2916_v26 = vadd.f32 %v2311_v15, %v1769_v22 }
 0xfb9   :  { %v1779_v27 = vadd.f32 0.00028619796, %v1778_v23  ;;  %v1790_v29 = vadd.f32 0.001143296, %v1789_v25  ;;  %v2919_v30 = vmul.f32 0.70710677, %v2916_v26 }
 0xfbb   :  { %v1780_v31 = vmul.f32 %v1779_v27, %v1777_v21  ;;  %v1791_v48 = vmul.f32 %v1790_v29, %v1777_v21  ;;  %v1816_v55 = vmul.f32 %v2919_v30, %v2919_v30 }
 0xfbd   :  { %v1792_v32 = vadd.f32 0.014752088, %v1791_v48  ;;  %v1781_v4 = vadd.f32 0.0036580483, %v1780_v31  ;;  %v1817_v58 = vmin.f32 %v1816_v55, 16.0 }
 0xfbf   :  { %v1793_v33 = vmul.f32 %v1792_v32, %v1777_v21  ;;  %v1818_v34 = vmul.f32 2.1237322e-06, %v1817_v58  ;;  %v1829_v0 = vmul.f32 3.8918573e-05, %v1817_v58  ;;  %v1782_v61 = vmul.f32 %v1781_v4, %v1777_v21 }
 0xfc0   :  { %v1772_v4 = vmul.f32 0.5, %v2909_v5  ;;  %v2312_v5 = vld [vmem:[#allocation2 + $0x188] ss:$0 sm:$0xff] }
 0xfc1   :  { %v1794_v54 = vadd.f32 0.112945676, %v1793_v33  ;;  %v1819_v52 = vadd.f32 0.00028619796, %v1818_v34  ;;  %v1830_v43 = vadd.f32 0.001143296, %v1829_v0 }
 0xfc2   :  { %v1783_v37 = vadd.f32 0.05243302, %v1782_v61 }
 0xfc3   :  { %v1795_v35 = vmul.f32 %v1794_v54, %v1777_v21  ;;  %v1820_v2 = vmul.f32 %v1819_v52, %v1817_v58  ;;  %v1831_v50 = vmul.f32 %v1830_v43, %v1817_v58  ;;  %v1773_v52 = vmul.f32 0.5, %v2916_v26 }
 0xfc4   :  { %v1784_v47 = vmul.f32 %v1783_v37, %v1777_v21 }
 0xfc5   :  { %v1796_v18 = vadd.f32 0.4994258, %v1795_v35  ;;  %v1832_v38 = vadd.f32 0.014752088, %v1831_v50  ;;  %v1821_v44 = vadd.f32 0.0036580483, %v1820_v2 }
 0xfc6   :  { %v1785_v63 = vadd.f32 0.18741608, %v1784_v47 }
 0xfc7   :  { %v1797_v40 = vmul.f32 %v1796_v18, %v1777_v21  ;;  %v1833_v45 = vmul.f32 %v1832_v38, %v1817_v58  ;;  %v1822_v51 = vmul.f32 %v1821_v44, %v1817_v58 }
 0xfc8   :  { %v1786_v62 = vmul.f32 %v1785_v63, %v1777_v21  ;;  %v1944_v63 = vld [vmem:[#allocation2 + $0x1b0] sm:$0xff] }
 0xfc9   :  { %v1798_v46 = vadd.f32 1.0, %v1797_v40  ;;  %v1834_v49 = vadd.f32 0.112945676, %v1833_v45  ;;  %v1823_v57 = vadd.f32 0.05243302, %v1822_v51 }
 0xfca   :  { %v1787_v39 = vadd.f32 1.1283791, %v1786_v62 }
 0xfcb   :  { %2408 = vrcp.f32 %v1798_v46  ;;  %v1835_v24 = vmul.f32 %v1834_v49, %v1817_v58  ;;  %v1824_v8 = vmul.f32 %v1823_v57, %v1817_v58  ;;  %v1810_v9 = vand.u32 2147483648, %v1798_v46  ;;  %v1942_v57 = vld [vmem:[#allocation2 + $0x1a0] sm:$0xff] }
 0xfcc   :  { %v1808_v12 = vand.u32 2147483647, %v1798_v46  ;;  %vm1804_vm13 = vweird.f32 %v1798_v46  ;;  %v1788_v17 = vmul.f32 %v1787_v39, %v2912_v19 }
 0xfcd   :  { %v1836_v7 = vadd.f32 0.4994258, %v1835_v24  ;;  %v1825_v6 = vadd.f32 0.18741608, %v1824_v8  ;;  %v1811_v28 = vor.u32 1.1754944e-38, %v1810_v9 }
 0xfce   :  { %vm1809_vm15 = vcmp.eq.f32.partialorder %v1808_v12, 8.507059e+37 }
 0xfcf   :  { %v1837_v59 = vmul.f32 %v1836_v7, %v1817_v58  ;;  %v1826_v22 = vmul.f32 %v1825_v6, %v1817_v58  ;;  %v1943_v7 = vld [vmem:[#allocation2 + $0x1a8] sm:$0xff] }
 0xfd1   :  { %v2409_v60 = vpop.eup %2408  ;;  %v1838_v3 = vadd.f32 1.0, %v1837_v59  ;;  %v1827_v48 = vadd.f32 1.1283791, %v1826_v22  ;;  %v2314_v22 = vld [vmem:[#allocation2 + $0x198] ss:$0 sm:$0xff] }
 0xfd2   :  { %v1800_v42 = vmul.f32 %v2409_v60, %v1798_v46  ;;  %vm1805_vm9 = vweird.f32 %v2409_v60 }
 0xfd3   :  { %2410 = vrcp.f32 %v1838_v3  ;;  %vm1806_vm14 = vmor %vm1804_vm13, %vm1805_vm9  ;;  %v1850_v31 = vand.u32 2147483648, %v1838_v3  ;;  %v1848_v32 = vand.u32 2147483647, %v1838_v3  ;;  %vm1844_vm1 = vweird.f32 %v1838_v3 }
 0xfd4   :  { %v1801_v41 = vsub.f32 1.0, %v1800_v42  ;;  %v1828_v0 = vmul.f32 %v1827_v48, %v2919_v30 }
 0xfd5   :  { %v1851_v19 = vor.u32 1.1754944e-38, %v1850_v31  ;;  %vm1849_vm4 = vcmp.eq.f32.partialorder %v1848_v32, 8.507059e+37 }
 0xfd6   :  { %v1802_v10 = vmul.f32 %v2409_v60, %v1801_v41 }
 0xfd8   :  { %v1803_v13 = vadd.f32 %v2409_v60, %v1802_v10 }
 0xfd9   :  { %v2411_v15 = vpop.eup %2410 }
 0xfda   :  { %v1807_v20 = vsel %vm1806_vm14, %v2409_v60, %v1803_v13  ;;  %v1840_v23 = vmul.f32 %v2411_v15, %v1838_v3  ;;  %vm1845_vm0 = vweird.f32 %v2411_v15 }
 0xfdb   :  { %v1812_v21 = vsel %vm1809_vm15, %v1811_v28, %v1807_v20  ;;  %vm1846_vm3 = vmor %vm1844_vm1, %vm1845_vm0  ;;  %v2313_v28 = vld [vmem:[#allocation2 + $0x190] ss:$0 sm:$0xff] }
 0xfdc   :  { %v1813_v25 = vmul.f32 %v1812_v21, %v1788_v17  ;;  %v1841_v27 = vsub.f32 1.0, %v1840_v23 }
 0xfde   :  { %v2243_v29 = vclamps-f32 %v1813_v25, 1.0  ;;  %v1842_v55 = vmul.f32 %v2411_v15, %v1841_v27 }
 0xfe0   :  { %v1856_v56 = vadd.f32 1.0, %v2243_v29  ;;  %v1843_v33 = vadd.f32 %v2411_v15, %v1842_v55 }
 0xfe2   :  { %v1858_v34 = vmul.f32 %v1856_v56, %v1772_v4  ;;  %v1847_v58 = vsel %vm1846_vm3, %v2411_v15, %v1843_v33  ;;  %v2315_v56 = vld [vmem:[#allocation2 + $0x1c0] ss:$0 sm:$0xff] }
 0xfe3   :  { %v1852_v53 = vsel %vm1849_vm4, %v1851_v19, %v1847_v58 }
 0xfe4   :  { %2245 = vmatmul.msk.f32.vlgmr.msrb.gmra.mxu3 %vm77_vm2, %v1858_v34  ;;  %v1853_v54 = vmul.f32 %v1852_v53, %v1828_v0 }
 0xfe6   :  { %v2244_v61 = vclamps-f32 %v1853_v54, 1.0 }
 0xfe8   :  { %v1857_v43 = vadd.f32 1.0, %v2244_v61 }
 0xfea   :  { %v1859_v1 = vmul.f32 %v1857_v43, %v1773_v52 }
 0xfec   :  { %2246 = vmatmul.msk.f32.gmra.mxu3 %vm77_vm2, %v1859_v1 }
0x1067   :  { %v1884_v35 = vpop.f32.mrf.mxu3 }
0x1068   :  { %v1885_v2 = vadd.f32 %v2312_v5, %v1884_v35 }
0x106a   :  { %v1890_v50 = vadd.f32 %v1885_v2, %v2901_v11 }
0x106c   :  { %v1892_v30 = vsel %vm77_vm2, %v1890_v50, 0.0 }
0x106d   :  { %1893 = vadd.xlane.f32.xlu0 %v1892_v30 }
0x106f   :  { %v1887_v36 = vpop.f32.mrf.mxu3 }
0x1070   :  { %v1888_v18 = vadd.f32 %v2312_v5, %v1887_v36  ;;  %v2034_v36 = vld [vmem:[#allocation2 + $0x1f0] sm:$0xff] }
0x1071   :  { %2055 = vmatpush.msra.mxu0 %v2034_v36 }
0x1072   :  { %v1891_v37 = vadd.f32 %v1888_v18, %v2905_v14  ;;  %v1945_v14 = vld [vmem:[#allocation2 + $0x1b8] sm:$0xff]  ;;  %v2033_v18 = vld [vmem:[#allocation2 + $0x1e8] sm:$0xff] }
0x1073   :  { %1966 = vmatpush.msra.mxu1 %v1945_v14  ;;  %2056 = vmatpush.msra.mxu0 %v2033_v18 }
0x1074   :  { %v1895_v38 = vsel %vm77_vm2, %v1891_v37, 0.0 }
0x1075   :  { %1896 = vadd.xlane.f32.xlu1 %v1895_v38  ;;  %1967 = vmatpush.msra.mxu1 %v1944_v63  ;;  %v2031_v38 = vld [vmem:[#allocation2 + $0x1d8] sm:$0xff] }
0x1077   :  { %1968 = vmatpush.msra.mxu1 %v1943_v7 }
0x1079   :  { %1969 = vmatpush.msra.mxu1 %v1942_v57  ;;  %v2316_v57 = vld [vmem:[#allocation2 + $0x1c8] ss:$0 sm:$0xff] }
0x10e0   :  { %v1894_v26 = vpop.xlane.xlu0 %1893 }
0x10e1   :  { %v1898_v40 = vmul.f32 %v1894_v26, %v2522_v16 }
0x10e3   :  { %v1900_v44 = vsub.f32 %v1890_v50, %v1898_v40 }
0x10e5   :  { %v1902_v45 = vmul.f32 %v1900_v44, %v1900_v44 }
0x10e7   :  { %v1904_v46 = vsel %vm77_vm2, %v1902_v45, 0.0 }
0x10e8   :  { %1905 = vadd.xlane.f32.xlu2 %v1904_v46  ;;  %v1897_v47 = vpop.xlane.xlu1 %1896 }
0x10e9   :  { %v1899_v11 = vmul.f32 %v1897_v47, %v2522_v16 }
0x10eb   :  { %v1901_v49 = vsub.f32 %v1891_v37, %v1899_v11  ;;  %v2032_v37 = vld [vmem:[#allocation2 + $0x1e0] sm:$0xff] }
0x10ec   :  { %2057 = vmatpush.msra.mxu0 %v2032_v37 }
0x10ed   :  { %v1903_v51 = vmul.f32 %v1901_v49, %v1901_v49 }
0x10ee   :  { %2058 = vmatpush.msra.mxu0 %v2031_v38 }
0x10ef   :  { %v1907_v24 = vsel %vm77_vm2, %v1903_v51, 0.0 }
0x10f0   :  { %1908 = vadd.xlane.f32.xlu0 %v1907_v24 }
0x115b   :  { %v1906_v59 = vpop.xlane.xlu2 %1905 }
0x115c   :  { %v1910_v60 = vmul.f32 %v1906_v59, %v2522_v16 }
0x115e   :  { %v1912_v62 = vadd.f32 1e-12, %v1910_v60 }
0x1160   :  { %2412 = vrsqrt.f32 %v1912_v62  ;;  %vm1920_vm10 = vweird.f32 %v1912_v62 }
0x1163   :  { %v1909_v42 = vpop.xlane.xlu0 %1908 }
0x1164   :  { %v1911_v3 = vmul.f32 %v1909_v42, %v2522_v16 }
0x1166   :  { %v2413_v8 = vpop.eup %2412  ;;  %v1913_v9 = vadd.f32 1e-12, %v1911_v3  ;;  %v2317_v3 = vld [vmem:[#allocation2 + $0x1d0] ss:$0 sm:$0xff] }
0x1167   :  { %v1915_v41 = vmul.f32 %v2413_v8, %v1912_v62  ;;  %vm1921_vm5 = vweird.f32 %v2413_v8 }
0x1168   :  { %2414 = vrsqrt.f32 %v1913_v9  ;;  %vm1922_vm11 = vmor %vm1920_vm10, %vm1921_vm5  ;;  %vm1930_vm6 = vweird.f32 %v1913_v9 }
0x1169   :  { %v1916_v39 = vmul.f32 %v2413_v8, %v1915_v41 }
0x116b   :  { %v1917_v10 = vmul.f32 0.5, %v1916_v39 }
0x116d   :  { %v1918_v12 = vsub.f32 1.5, %v1917_v10 }
0x116e   :  { %v2415_v6 = vpop.eup %2414 }
0x116f   :  { %v1919_v13 = vmul.f32 %v2413_v8, %v1918_v12  ;;  %v1925_v15 = vmul.f32 %v2415_v6, %v1913_v9  ;;  %vm1931_vm12 = vweird.f32 %v2415_v6 }
0x1170   :  { %vm1932_vm7 = vmor %vm1930_vm6, %vm1931_vm12 }
0x1171   :  { %v1923_v17 = vsel %vm1922_vm11, %v2413_v8, %v1919_v13  ;;  %v1926_v21 = vmul.f32 %v2415_v6, %v1925_v15 }
0x1172   :  { %v1934_v20 = vmul.f32 %v1923_v17, %v1900_v44 }
0x1173   :  { %v1927_v25 = vmul.f32 0.5, %v1926_v21 }
0x1174   :  { %v1937_v23 = vmul.f32 %v2313_v28, %v1934_v20  ;;  %v2318_v20 = vld [vmem:[#allocation2 + $0x1f8] ss:$0 sm:$0xff] }
0x1175   :  { %v1928_v27 = vsub.f32 1.5, %v1927_v25 }
0x1176   :  { %v1940_v29 = vadd.f32 %v2314_v22, %v1937_v23 }
0x1177   :  { %v1929_v31 = vmul.f32 %v2415_v6, %v1928_v27 }
0x1178   :  { %2247 = vmatmul.msk.f32.vlgmr.msra.gmra.mxu1 %vm77_vm2, %v1940_v29 }
0x1179   :  { %v1933_v48 = vsel %vm1932_vm7, %v2415_v6, %v1929_v31 }
0x117a   :  { %v1935_v55 = vmul.f32 %v1933_v48, %v1901_v49 }
0x117c   :  { %v1938_v32 = vmul.f32 %v2313_v28, %v1935_v55 }
0x117e   :  { %v1941_v4 = vadd.f32 %v2314_v22, %v1938_v32 }
0x1180   :  { %2248 = vmatmul.msk.f32.gmra.mxu1 %vm77_vm2, %v1941_v4 }
0x11f5   :  { %v1971_v33 = vpop.f32.mrf.mxu1 }
0x11f6   :  { %v1972_v34 = vadd.f32 %v2315_v56, %v1971_v33 }
0x11f8   :  { %v1979_v19 = vsel %vm77_vm2, %v1972_v34, 0.0 }
0x11f9   :  { %1980 = vadd.xlane.f32.xlu1 %v1979_v19 }
0x11fd   :  { %v1974_v0 = vpop.f32.mrf.mxu1 }
0x11fe   :  { %v1975_v58 = vadd.f32 %v2315_v56, %v1974_v0 }
0x1200   :  { %v1982_v53 = vsel %vm77_vm2, %v1975_v58, 0.0 }
0x1201   :  { %1983 = vadd.xlane.f32.xlu2 %v1982_v53  ;;  %v2122_v53 = vld [vmem:[#allocation2 + $0x220] sm:$0xff] }
0x126c   :  { %v1981_v54 = vpop.xlane.xlu1 %1980 }
0x126d   :  { %v1985_v61 = vmul.f32 %v1981_v54, %v2522_v16  ;;  %v2121_v54 = vld [vmem:[#allocation2 + $0x218] sm:$0xff] }
0x126f   :  { %v1987_v52 = vsub.f32 %v1972_v34, %v1985_v61  ;;  %v2120_v61 = vld [vmem:[#allocation2 + $0x210] sm:$0xff] }
0x1271   :  { %v1989_v43 = vmul.f32 %v1987_v52, %v1987_v52 }
0x1273   :  { %v1991_v1 = vsel %vm77_vm2, %v1989_v43, 0.0 }
0x1274   :  { %1992 = vadd.xlane.f32.xlu0 %v1991_v1  ;;  %v1984_v5 = vpop.xlane.xlu2 %1983 }
0x1275   :  { %v1986_v35 = vmul.f32 %v1984_v5, %v2522_v16 }
0x1277   :  { %v1988_v2 = vsub.f32 %v1975_v58, %v1986_v35  ;;  %v2123_v58 = vld [vmem:[#allocation2 + $0x228] sm:$0xff] }
0x1278   :  { %2144 = vmatpush.msra.mxu2 %v2123_v58 }
0x1279   :  { %v1990_v50 = vmul.f32 %v1988_v2, %v1988_v2 }
0x127a   :  { %2145 = vmatpush.msra.mxu2 %v2122_v53 }
0x127b   :  { %v1994_v30 = vsel %vm77_vm2, %v1990_v50, 0.0 }
0x127c   :  { %1995 = vadd.xlane.f32.xlu1 %v1994_v30  ;;  %2146 = vmatpush.msra.mxu2 %v2121_v54 }
0x127e   :  { %2147 = vmatpush.msra.mxu2 %v2120_v61 }
0x12e7   :  { %v1993_v26 = vpop.xlane.xlu0 %1992 }
0x12e8   :  { %v1997_v40 = vmul.f32 %v1993_v26, %v2522_v16 }
0x12ea   :  { %v1999_v44 = vadd.f32 1e-05, %v1997_v40  ;;  %v2319_v40 = vld [vmem:[#allocation2 + $0x200] ss:$0 sm:$0xff] }
0x12ec   :  { %2416 = vrsqrt.f32 %v1999_v44  ;;  %vm2007_vm9 = vweird.f32 %v1999_v44 }
0x12ef   :  { %v1996_v45 = vpop.xlane.xlu1 %1995 }
0x12f0   :  { %v1998_v46 = vmul.f32 %v1996_v45, %v2522_v16 }
0x12f2   :  { %v2417_v47 = vpop.eup %2416  ;;  %v2000_v49 = vadd.f32 1e-05, %v1998_v46 }
0x12f3   :  { %v2002_v11 = vmul.f32 %v2417_v47, %v1999_v44  ;;  %vm2008_vm8 = vweird.f32 %v2417_v47 }
0x12f4   :  { %2418 = vrsqrt.f32 %v2000_v49  ;;  %vm2009_vm13 = vmor %vm2007_vm9, %vm2008_vm8  ;;  %vm2017_vm15 = vweird.f32 %v2000_v49 }
0x12f5   :  { %v2003_v51 = vmul.f32 %v2417_v47, %v2002_v11  ;;  %v2320_v11 = vld [vmem:[#allocation2 + $0x208] ss:$0 sm:$0xff] }
0x12f7   :  { %v2004_v24 = vmul.f32 0.5, %v2003_v51 }
0x12f9   :  { %v2005_v14 = vsub.f32 1.5, %v2004_v24 }
0x12fa   :  { %v2419_v63 = vpop.eup %2418 }
0x12fb   :  { %v2006_v7 = vmul.f32 %v2417_v47, %v2005_v14  ;;  %v2012_v59 = vmul.f32 %v2419_v63, %v2000_v49  ;;  %vm2018_vm14 = vweird.f32 %v2419_v63 }
0x12fc   :  { %vm2019_vm0 = vmor %vm2017_vm15, %vm2018_vm14 }
0x12fd   :  { %v2010_v60 = vsel %vm2009_vm13, %v2417_v47, %v2006_v7  ;;  %v2013_v42 = vmul.f32 %v2419_v63, %v2012_v59 }
0x12fe   :  { %v2021_v62 = vmul.f32 %v2010_v60, %v1987_v52 }
0x12ff   :  { %v2014_v41 = vmul.f32 0.5, %v2013_v42  ;;  %v2321_v42 = vld [vmem:[#allocation2 + $0x230] ss:$0 sm:$0xff] }
0x1300   :  { %v2024_v8 = vmul.f32 %v2316_v57, %v2021_v62 }
0x1301   :  { %v2015_v9 = vsub.f32 1.5, %v2014_v41 }
0x1302   :  { %v2027_v39 = vadd.f32 %v2317_v3, %v2024_v8 }
0x1303   :  { %v2016_v10 = vmul.f32 %v2419_v63, %v2015_v9 }
0x1304   :  { %v2029_v12 = vmax.f32 %v2027_v39, 0.0 }
0x1305   :  { %v2020_v6 = vsel %vm2019_vm0, %v2419_v63, %v2016_v10 }
0x1306   :  { %2249 = vmatmul.msk.f32.vlgmr.msra.gmra.mxu0 %vm77_vm2, %v2029_v12  ;;  %v2022_v13 = vmul.f32 %v2020_v6, %v1988_v2 }
0x1308   :  { %v2025_v28 = vmul.f32 %v2316_v57, %v2022_v13 }
0x130a   :  { %v2028_v15 = vadd.f32 %v2317_v3, %v2025_v28 }
0x130c   :  { %v2030_v17 = vmax.f32 %v2028_v15, 0.0 }
0x130e   :  { %2250 = vmatmul.msk.f32.gmra.mxu0 %vm77_vm2, %v2030_v17 }
0x1383   :  { %v2060_v21 = vpop.f32.mrf.mxu0 }
0x1384   :  { %v2061_v22 = vadd.f32 %v2318_v20, %v2060_v21 }
0x1386   :  { %v2068_v23 = vsel %vm77_vm2, %v2061_v22, 0.0 }
0x1387   :  { %2069 = vadd.xlane.f32.xlu2 %v2068_v23 }
0x138b   :  { %v2063_v25 = vpop.f32.mrf.mxu0 }
0x138c   :  { %v2064_v27 = vadd.f32 %v2318_v20, %v2063_v25 }
0x138e   :  { %v2071_v29 = vsel %vm77_vm2, %v2064_v27, 0.0 }
0x138f   :  { %2072 = vadd.xlane.f32.xlu0 %v2071_v29 }
0x13fa   :  { %v2070_v31 = vpop.xlane.xlu2 %2069 }
0x13fb   :  { %v2074_v48 = vmul.f32 %v2070_v31, %v2522_v16 }
0x13fd   :  { %v2076_v55 = vsub.f32 %v2061_v22, %v2074_v48 }
0x13ff   :  { %v2078_v32 = vmul.f32 %v2076_v55, %v2076_v55 }
0x1401   :  { %v2080_v4 = vsel %vm77_vm2, %v2078_v32, 0.0 }
0x1402   :  { %2081 = vadd.xlane.f32.xlu1 %v2080_v4  ;;  %v2073_v56 = vpop.xlane.xlu0 %2072 }
0x1403   :  { %v2075_v33 = vmul.f32 %v2073_v56, %v2522_v16 }
0x1405   :  { %v2077_v34 = vsub.f32 %v2064_v27, %v2075_v33 }
0x1407   :  { %v2079_v19 = vmul.f32 %v2077_v34, %v2077_v34 }
0x1409   :  { %v2083_v0 = vsel %vm77_vm2, %v2079_v19, 0.0 }
0x140a   :  { %2084 = vadd.xlane.f32.xlu2 %v2083_v0 }
0x1475   :  { %v2082_v52 = vpop.xlane.xlu1 %2081 }
0x1476   :  { %v2086_v43 = vmul.f32 %v2082_v52, %v2522_v16 }
0x1478   :  { %v2088_v1 = vadd.f32 1e-05, %v2086_v43 }
0x147a   :  { %2420 = vrsqrt.f32 %v2088_v1  ;;  %vm2096_vm3 = vweird.f32 %v2088_v1 }
0x147d   :  { %v2085_v5 = vpop.xlane.xlu2 %2084 }
0x147e   :  { %v2087_v35 = vmul.f32 %v2085_v5, %v2522_v16 }
0x1480   :  { %v2421_v2 = vpop.eup %2420  ;;  %v2089_v30 = vadd.f32 1e-05, %v2087_v35 }
0x1481   :  { %v2091_v50 = vmul.f32 %v2421_v2, %v2088_v1  ;;  %vm2097_vm1 = vweird.f32 %v2421_v2 }
0x1482   :  { %2422 = vrsqrt.f32 %v2089_v30  ;;  %vm2098_vm4 = vmor %vm2096_vm3, %vm2097_vm1  ;;  %vm2106_vm10 = vweird.f32 %v2089_v30 }
0x1483   :  { %v2092_v36 = vmul.f32 %v2421_v2, %v2091_v50 }
0x1485   :  { %v2093_v18 = vmul.f32 0.5, %v2092_v36 }
0x1487   :  { %v2094_v37 = vsub.f32 1.5, %v2093_v18 }
0x1488   :  { %v2423_v38 = vpop.eup %2422 }
0x1489   :  { %v2095_v26 = vmul.f32 %v2421_v2, %v2094_v37  ;;  %v2101_v44 = vmul.f32 %v2423_v38, %v2089_v30  ;;  %vm2107_vm5 = vweird.f32 %v2423_v38 }
0x148a   :  { %vm2108_vm11 = vmor %vm2106_vm10, %vm2107_vm5 }
0x148b   :  { %v2099_v45 = vsel %vm2098_vm4, %v2421_v2, %v2095_v26  ;;  %v2102_v47 = vmul.f32 %v2423_v38, %v2101_v44 }
0x148c   :  { %v2110_v46 = vmul.f32 %v2099_v45, %v2076_v55 }
0x148d   :  { %v2103_v16 = vmul.f32 0.5, %v2102_v47 }
0x148e   :  { %v2113_v49 = vmul.f32 %v2319_v40, %v2110_v46 }
0x148f   :  { %v2104_v51 = vsub.f32 1.5, %v2103_v16 }
0x1490   :  { %v2116_v24 = vadd.f32 %v2320_v11, %v2113_v49 }
0x1491   :  { %v2105_v14 = vmul.f32 %v2423_v38, %v2104_v51 }
0x1492   :  { %v2118_v63 = vmax.f32 %v2116_v24, 0.0 }
0x1493   :  { %v2109_v7 = vsel %vm2108_vm11, %v2423_v38, %v2105_v14 }
0x1494   :  { %2251 = vmatmul.msk.f32.vlgmr.msra.gmra.mxu2 %vm77_vm2, %v2118_v63  ;;  %v2111_v57 = vmul.f32 %v2109_v7, %v2077_v34 }
0x1496   :  { %v2114_v59 = vmul.f32 %v2319_v40, %v2111_v57 }
0x1498   :  { %v2117_v60 = vadd.f32 %v2320_v11, %v2114_v59 }
0x149a   :  { %v2119_v62 = vmax.f32 %v2117_v60, 0.0 }
0x149c   :  { %2252 = vmatmul.msk.f32.gmra.mxu2 %vm77_vm2, %v2119_v62 }
0x1517   :  { %v2149_v3 = vpop.f32.mrf.mxu2 }
0x1518   :  { %v2150_v8 = vadd.f32 %v2321_v42, %v2149_v3 }
0x151a   :  { %2155 = vst [vmem:[#allocation5] sm:$0xff] %v2150_v8 }
0x151f   :  { %v2152_v41 = vpop.f32.mrf.mxu2 }
0x1520   :  { %v2153_v9 = vadd.f32 %v2321_v42, %v2152_v41 }
0x1522   :  { %2156 = vst [vmem:[#allocation5 + $0x8] sm:$0xff] %v2153_v9 }
0x1523   :  { %2169 = dma.vmem_to_hbm [thread:$0]  %s2162_s30, 256, %s2164_s6, [#allocation4], %s2477_s17, %s2477_s17, %s2478_s18  }
0x1524   :  { %2474 = dma.done.wait [#allocation4], 256  }
0x1525   :  { %2475 = vsyncadd [#allocation4], 4294967040 }
0x1526   :  { %2174 = vsyncpa [#allocation3], 1 }
0x1527   :  { %2175 = vsyncpa [#allocation4], 1 }

</bundles_post_ra>
